<compile_context>
chip_gen: v6e
topology: v6e:2x2x1
jax: 0.10.0
libtpu: 0.0.40
codegen_flags: <defaults>
</compile_context>

<pallas_src>
import functools

import jax
import jax.numpy as jnp
from jax import lax
from jax.experimental import pallas as pl
from jax.experimental.pallas import tpu as pltpu


def lstm_skew_kernel(ih0_ref,          # (T, BLK, 4H)  hoisted x@W_ih0 + b0, time-major
                     wskew_ref,        # (2H, 8H)      [[W_hh0, W_ih1], [0, W_hh1]]
                     b1_ref,           # (1, 4H)       b_ih1 + b_hh1
                     wfc_ref,          # (H, O)
                     bfc_ref,          # (1, O)
                     out_ref,          # (BLK, O)
                     *, seq_len, hidden_size):
    T, H = seq_len, hidden_size
    G = 4 * H
    BLK = ih0_ref.shape[1]

    w_skew = wskew_ref[...]
    mm_dtype = w_skew.dtype            # f32, or bf16 on the fast path
    b1 = b1_ref[...]

    # Hoisted lane masks / constants for the single-tanh activation.
    lane = lax.broadcasted_iota(jnp.int32, (BLK, G), 1)
    g_mask = (lane >= 2 * H) & (lane < 3 * H)          # 'g' gate lanes -> tanh
    pre_scale = jnp.where(g_mask, 1.0, 0.5).astype(jnp.float32)   # x or x/2
    post_bias = jnp.where(g_mask, 0.0, 0.5).astype(jnp.float32)   # tanh or 0.5*t+0.5

    def act_split(gates):
        # One EUP pass per gate vector: sigmoid(x) = 0.5*(1 + tanh(x/2)).
        t = jnp.tanh(gates * pre_scale)
        a = t * pre_scale + post_bias
        return a[:, 0:H], a[:, H:2 * H], a[:, 2 * H:3 * H], a[:, 3 * H:4 * H]

    # ---- prologue (s = 0): layer-0 time 0; h0_{-1}=c0_{-1}=0 so gates0 = ih0[0]. ----
    i0, f0, g0, o0 = act_split(ih0_ref[0])
    c0 = i0 * g0
    h0 = o0 * jnp.tanh(c0)
    h1 = jnp.zeros((BLK, H), jnp.float32)
    c1 = jnp.zeros((BLK, H), jnp.float32)

    # ---- skewed steps s = 1..T-1 (fully unrolled; T static & tiny):
    #      ONE (BLK,2H)x(2H,8H) matmul gives [gates0_s | gates1_{s-1}]. ----
    for s in range(1, T):
        lhs = jnp.concatenate([h0, h1], axis=-1).astype(mm_dtype)     # [h0_{s-1} | h1_{s-2}]
        fused = jnp.dot(lhs, w_skew, preferred_element_type=jnp.float32)
        gates0 = fused[:, 0:G] + ih0_ref[s]
        gates1 = fused[:, G:2 * G] + b1

        i1, f1, g1, o1 = act_split(gates1)        # layer-1, time s-1
        c1 = f1 * c1 + i1 * g1
        h1 = o1 * jnp.tanh(c1)

        i0, f0, g0, o0 = act_split(gates0)        # layer-0, time s
        c0 = f0 * c0 + i0 * g0
        h0 = o0 * jnp.tanh(c0)

    # ---- epilogue: layer-1 time T-1 (left half of the fused result is unused). ----
    lhs = jnp.concatenate([h0, h1], axis=-1).astype(mm_dtype)
    fused = jnp.dot(lhs, w_skew, preferred_element_type=jnp.float32)
    gates1 = fused[:, G:2 * G] + b1
    i1, f1, g1, o1 = act_split(gates1)
    c1 = f1 * c1 + i1 * g1
    h1 = o1 * jnp.tanh(c1)

    # ---- fc on the last timestep's top-layer hidden state. ----
    # TODO(synk): if output_size grows, pad O to a lane multiple of 128 wrapper-side
    # so this becomes an unmasked store; at O=1 it is a single masked vst (negligible).
    out_ref[...] = (jnp.dot(h1, wfc_ref[...], preferred_element_type=jnp.float32)
                    + bfc_ref[...])


def lstm_forward(x, params, hidden_size, *, use_bf16_matmul=False, rows_per_block=8):
    """x: (B, T, input_size) float32. params: dict from make_params."""
    B, T, In = x.shape
    H = hidden_size
    O = params["w_fc"].shape[1]
    BLK = rows_per_block
    Bp = max(BLK, pl.cdiv(B, BLK) * BLK)

    # Pad batch to a sublane multiple and go time-major; the layer-0 input
    # projection is plain XLA (off the critical path, fuses with pad/transpose).
    xp = jnp.zeros((Bp, T, In), jnp.float32).at[:B].set(x)
    x_tm = jnp.transpose(xp, (1, 0, 2))                                   # (T, Bp, In)
    ih0_all = jnp.einsum("tbi,ig->tbg", x_tm, params["w_ih0"]) + params["b0"]  # (T, Bp, 4H)

    w_skew = params["w_skew"]
    if use_bf16_matmul:
        # v6e/v7x fast path: bf16 MXU operands, f32 accumulation/elementwise.
        w_skew = w_skew.astype(jnp.bfloat16)

    kernel = functools.partial(lstm_skew_kernel, seq_len=T, hidden_size=H)

    out = pl.pallas_call(
        kernel,
        out_shape=jax.ShapeDtypeStruct((Bp, O), jnp.float32),
        grid=(Bp // BLK,),                                   # independent row-blocks
        in_specs=[
            pl.BlockSpec((T, BLK, 4 * H), lambda i: (0, i, 0)),
            pl.BlockSpec((2 * H, 8 * H), lambda i: (0, 0)),
            pl.BlockSpec((1, 4 * H), lambda i: (0, 0)),
            pl.BlockSpec((H, O), lambda i: (0, 0)),
            pl.BlockSpec((1, O), lambda i: (0, 0)),
        ],
        out_specs=pl.BlockSpec((BLK, O), lambda i: (i, 0)),
        compiler_params=pltpu.CompilerParams(dimension_semantics=("parallel",)),
    )(ih0_all, w_skew, params["b1"], params["w_fc"], params["b_fc"])
    return out[:B]


def make_params(key, input_size, hidden_size, num_layers, output_size):
    """PyTorch-style init: U(-1/sqrt(H), 1/sqrt(H)) for LSTM, U(-1/sqrt(fan_in), ...) for
    Linear. Weights pre-transposed for the kernel, b_ih+b_hh pre-summed, and the skewed
    two-layer recurrent weight [[W_hh0, W_ih1], [0, W_hh1]] pre-built wrapper-side."""
    assert num_layers == 2  # kernel is written for the 2-layer module
    H = hidden_size
    k = 1.0 / jnp.sqrt(jnp.float32(H))
    keys = jax.random.split(key, 10)

    def u(kk, shape, bound):
        return jax.random.uniform(kk, shape, jnp.float32, -bound, bound)

    # layer 0 (input_size -> H)
    w_ih0 = u(keys[0], (4 * H, input_size), k)
    w_hh0 = u(keys[1], (4 * H, H), k)
    b_ih0 = u(keys[2], (4 * H,), k)
    b_hh0 = u(keys[3], (4 * H,), k)
    # layer 1 (H -> H)
    w_ih1 = u(keys[4], (4 * H, H), k)
    w_hh1 = u(keys[5], (4 * H, H), k)
    b_ih1 = u(keys[6], (4 * H,), k)
    b_hh1 = u(keys[7], (4 * H,), k)
    # fc
    kf = 1.0 / jnp.sqrt(jnp.float32(H))
    w_fc = u(keys[8], (output_size, H), kf)
    b_fc = u(keys[9], (output_size,), kf)

    # Skewed recurrent weight: [h0 | h1] @ w_skew = [h0@Whh0^T | h0@Wih1^T + h1@Whh1^T].
    w_skew = jnp.concatenate(
        [jnp.concatenate([w_hh0.T, w_ih1.T], axis=1),
         jnp.concatenate([jnp.zeros((H, 4 * H), jnp.float32), w_hh1.T], axis=1)],
        axis=0)                                                   # (2H, 8H)

    return {
        # kernel / wrapper params
        "w_ih0": w_ih0.T, "b0": (b_ih0 + b_hh0)[None, :],
        "w_skew": w_skew, "b1": (b_ih1 + b_hh1)[None, :],
        "w_fc": w_fc.T, "b_fc": b_fc[None, :],
        # kept un-fused for the pure-JAX reference
        "w_hh0": w_hh0.T, "w_ih1": w_ih1.T, "w_hh1": w_hh1.T,
    }


def lstm_forward_ref(x, params, hidden_size):
    """Pure-JAX reference (same math as torch nn.LSTM + Linear on last step)."""
    B, T, _ = x.shape
    H = hidden_size

    def run_layer(seq, w_ih, w_hh, b):
        def step(carry, xt):
            h, c = carry
            gates = xt @ w_ih + h @ w_hh + b
            i = jax.nn.sigmoid(gates[:, 0 * H:1 * H])
            f = jax.nn.sigmoid(gates[:, 1 * H:2 * H])
            g = jnp.tanh(gates[:, 2 * H:3 * H])
            o = jax.nn.sigmoid(gates[:, 3 * H:4 * H])
            c = f * c + i * g
            h = o * jnp.tanh(c)
            return (h, c), h
        init = (jnp.zeros((B, H)), jnp.zeros((B, H)))
        _, hs = lax.scan(step, init, jnp.swapaxes(seq, 0, 1))
        return jnp.swapaxes(hs, 0, 1)

    h0 = run_layer(x, params["w_ih0"], params["w_hh0"], params["b0"])
    h1 = run_layer(h0, params["w_ih1"], params["w_hh1"], params["b1"])
    return h1[:, -1, :] @ params["w_fc"] + params["b_fc"]


if __name__ == "__main__":
    # Module config: LSTM(input_size=4, hidden_size=32, num_layers=2, output_size=1)
    input_size, hidden_size, num_layers, output_size = 4, 32, 2, 1
    batch, seq = 2, 8

    key = jax.random.PRNGKey(0)
    kx, kp = jax.random.split(key)
    x = jax.random.normal(kx, (batch, seq, input_size), jnp.float32)
    params = make_params(kp, input_size, hidden_size, num_layers, output_size)

    ref = lstm_forward_ref(x, params, hidden_size)

    # Default (f32 MXU operands): tight match vs. the reference.
    out = jax.block_until_ready(lstm_forward(x, params, hidden_size))
    assert out.shape == (batch, output_size)
    assert jnp.allclose(out, ref, atol=1e-5, rtol=1e-5)

    # bf16-operand fast path (v6e/v7x): looser tolerance, per the review.
    out_bf16 = jax.block_until_ready(
        lstm_forward(x, params, hidden_size, use_bf16_matmul=True))
    assert jnp.allclose(out_bf16, ref, atol=5e-2, rtol=5e-2)

    print("KERNEL_OK")
</pallas_src>

<mosaic_0001>
module attributes {stable_mosaic.version = 11 : i64} {
  func.func @lstm_skew_kernel(%arg0: i32, %arg1: memref<8x8x128xf32, #tpu.memory_space<vmem>>, %arg2: memref<64x256xf32, #tpu.memory_space<vmem>>, %arg3: memref<1x128xf32, #tpu.memory_space<vmem>>, %arg4: memref<32x1xf32, #tpu.memory_space<vmem>>, %arg5: memref<1x1xf32, #tpu.memory_space<vmem>>, %arg6: memref<8x1xf32, #tpu.memory_space<vmem>>) attributes {dimension_semantics = [#tpu.dimension_semantics<parallel>], iteration_bounds = array<i64: 1>, scalar_prefetch = 0 : i64, scratch_operands = 0 : i64, tpu.core_type = #tpu.core_type<tc>, window_params = [{transform_indices = @transform_0, window_bounds = array<i64: 8, 8, 128>}, {pipeline_mode = #tpu.pipeline_mode<synchronous>, transform_indices = @transform_1, window_bounds = array<i64: 64, 256>}, {pipeline_mode = #tpu.pipeline_mode<synchronous>, transform_indices = @transform_2, window_bounds = array<i64: 1, 128>}, {pipeline_mode = #tpu.pipeline_mode<synchronous>, transform_indices = @transform_3, window_bounds = array<i64: 32, 1>}, {pipeline_mode = #tpu.pipeline_mode<synchronous>, transform_indices = @transform_4, window_bounds = array<i64: 1, 1>}, {transform_indices = @transform_5, window_bounds = array<i64: 8, 1>}]} {
    %c0 = arith.constant 0 : index
    %c0_0 = arith.constant 0 : index
    %0 = vector.load %arg2[%c0, %c0_0] : memref<64x256xf32, #tpu.memory_space<vmem>>, vector<64x256xf32>
    %c0_1 = arith.constant 0 : index
    %c0_2 = arith.constant 0 : index
    %1 = vector.load %arg3[%c0_1, %c0_2] : memref<1x128xf32, #tpu.memory_space<vmem>>, vector<1x128xf32>
    %2 = tpu.iota {dimensions = array<i32: 1>} : vector<8x128xi32>
    %c64_i32 = arith.constant 64 : i32
    %3 = vector.broadcast %c64_i32 : i32 to vector<8x128xi32>
    %4 = arith.cmpi sge, %2, %3 : vector<8x128xi32>
    %c96_i32 = arith.constant 96 : i32
    %5 = vector.broadcast %c96_i32 : i32 to vector<8x128xi32>
    %6 = arith.cmpi slt, %2, %5 : vector<8x128xi32>
    %7 = arith.andi %4, %6 : vector<8x128xi1>
    %cst = arith.constant 1.000000e+00 : f32
    %cst_3 = arith.constant 5.000000e-01 : f32
    %8 = vector.broadcast %cst : f32 to vector<8x128xf32>
    %9 = vector.broadcast %cst_3 : f32 to vector<8x128xf32>
    %10 = arith.select %7, %8, %9 : vector<8x128xi1>, vector<8x128xf32>
    %cst_4 = arith.constant 0.000000e+00 : f32
    %cst_5 = arith.constant 5.000000e-01 : f32
    %11 = vector.broadcast %cst_4 : f32 to vector<8x128xf32>
    %12 = vector.broadcast %cst_5 : f32 to vector<8x128xf32>
    %13 = arith.select %7, %11, %12 : vector<8x128xi1>, vector<8x128xf32>
    %c0_6 = arith.constant 0 : index
    %c0_7 = arith.constant 0 : index
    %c0_8 = arith.constant 0 : index
    %14 = vector.load %arg1[%c0_6, %c0_7, %c0_8] : memref<8x8x128xf32, #tpu.memory_space<vmem>>, vector<1x8x128xf32>
    %15 = vector.shape_cast %14 : vector<1x8x128xf32> to vector<8x128xf32>
    %16 = arith.mulf %15, %10 : vector<8x128xf32>
    %17 = math.tanh %16 : vector<8x128xf32>
    %18 = arith.mulf %17, %10 : vector<8x128xf32>
    %19 = arith.addf %18, %13 : vector<8x128xf32>
    %20 = vector.extract_strided_slice %19 {offsets = [0, 0], sizes = [8, 32], strides = [1, 1]} : vector<8x128xf32> to vector<8x32xf32>
    %21 = vector.extract_strided_slice %19 {offsets = [0, 64], sizes = [8, 32], strides = [1, 1]} : vector<8x128xf32> to vector<8x32xf32>
    %22 = vector.extract_strided_slice %19 {offsets = [0, 96], sizes = [8, 32], strides = [1, 1]} : vector<8x128xf32> to vector<8x32xf32>
    %23 = arith.mulf %20, %21 : vector<8x32xf32>
    %24 = math.tanh %23 : vector<8x32xf32>
    %25 = arith.mulf %22, %24 : vector<8x32xf32>
    %cst_9 = arith.constant 0.000000e+00 : f32
    %26 = vector.broadcast %cst_9 : f32 to vector<8x32xf32>
    %cst_10 = arith.constant 0.000000e+00 : f32
    %27 = vector.broadcast %cst_10 : f32 to vector<8x32xf32>
    %28 = tpu.concatenate %25, %26 in 1 : vector<8x32xf32>, vector<8x32xf32> -> vector<8x64xf32>
    %cst_11 = arith.constant dense<0.000000e+00> : vector<8x256xf32>
    %29 = tpu.matmul %28, %0, %cst_11 {dimension_numbers = #tpu.dot_dimension_numbers<[1], [0], [0], [1], [0, 0, 1, 1], [], []>} : vector<8x64xf32>, vector<64x256xf32>, vector<8x256xf32> -> vector<8x256xf32>
    %30 = vector.extract_strided_slice %29 {offsets = [0, 0], sizes = [8, 128], strides = [1, 1]} : vector<8x256xf32> to vector<8x128xf32>
    %c1 = arith.constant 1 : index
    %c0_12 = arith.constant 0 : index
    %c0_13 = arith.constant 0 : index
    %31 = vector.load %arg1[%c1, %c0_12, %c0_13] : memref<8x8x128xf32, #tpu.memory_space<vmem>>, vector<1x8x128xf32>
    %32 = vector.shape_cast %31 : vector<1x8x128xf32> to vector<8x128xf32>
    %33 = arith.addf %30, %32 : vector<8x128xf32>
    %34 = vector.extract_strided_slice %29 {offsets = [0, 128], sizes = [8, 128], strides = [1, 1]} : vector<8x256xf32> to vector<8x128xf32>
    %35 = vector.broadcast %1 : vector<1x128xf32> to vector<8x128xf32>
    %36 = arith.addf %34, %35 : vector<8x128xf32>
    %37 = arith.mulf %36, %10 : vector<8x128xf32>
    %38 = math.tanh %37 : vector<8x128xf32>
    %39 = arith.mulf %38, %10 : vector<8x128xf32>
    %40 = arith.addf %39, %13 : vector<8x128xf32>
    %41 = vector.extract_strided_slice %40 {offsets = [0, 0], sizes = [8, 32], strides = [1, 1]} : vector<8x128xf32> to vector<8x32xf32>
    %42 = vector.extract_strided_slice %40 {offsets = [0, 32], sizes = [8, 32], strides = [1, 1]} : vector<8x128xf32> to vector<8x32xf32>
    %43 = vector.extract_strided_slice %40 {offsets = [0, 64], sizes = [8, 32], strides = [1, 1]} : vector<8x128xf32> to vector<8x32xf32>
    %44 = vector.extract_strided_slice %40 {offsets = [0, 96], sizes = [8, 32], strides = [1, 1]} : vector<8x128xf32> to vector<8x32xf32>
    %45 = arith.mulf %42, %27 : vector<8x32xf32>
    %46 = arith.mulf %41, %43 : vector<8x32xf32>
    %47 = arith.addf %45, %46 : vector<8x32xf32>
    %48 = math.tanh %47 : vector<8x32xf32>
    %49 = arith.mulf %44, %48 : vector<8x32xf32>
    %50 = arith.mulf %33, %10 : vector<8x128xf32>
    %51 = math.tanh %50 : vector<8x128xf32>
    %52 = arith.mulf %51, %10 : vector<8x128xf32>
    %53 = arith.addf %52, %13 : vector<8x128xf32>
    %54 = vector.extract_strided_slice %53 {offsets = [0, 0], sizes = [8, 32], strides = [1, 1]} : vector<8x128xf32> to vector<8x32xf32>
    %55 = vector.extract_strided_slice %53 {offsets = [0, 32], sizes = [8, 32], strides = [1, 1]} : vector<8x128xf32> to vector<8x32xf32>
    %56 = vector.extract_strided_slice %53 {offsets = [0, 64], sizes = [8, 32], strides = [1, 1]} : vector<8x128xf32> to vector<8x32xf32>
    %57 = vector.extract_strided_slice %53 {offsets = [0, 96], sizes = [8, 32], strides = [1, 1]} : vector<8x128xf32> to vector<8x32xf32>
    %58 = arith.mulf %55, %23 : vector<8x32xf32>
    %59 = arith.mulf %54, %56 : vector<8x32xf32>
    %60 = arith.addf %58, %59 : vector<8x32xf32>
    %61 = math.tanh %60 : vector<8x32xf32>
    %62 = arith.mulf %57, %61 : vector<8x32xf32>
    %63 = tpu.concatenate %62, %49 in 1 : vector<8x32xf32>, vector<8x32xf32> -> vector<8x64xf32>
    %cst_14 = arith.constant dense<0.000000e+00> : vector<8x256xf32>
    %64 = tpu.matmul %63, %0, %cst_14 {dimension_numbers = #tpu.dot_dimension_numbers<[1], [0], [0], [1], [0, 0, 1, 1], [], []>} : vector<8x64xf32>, vector<64x256xf32>, vector<8x256xf32> -> vector<8x256xf32>
    %65 = vector.extract_strided_slice %64 {offsets = [0, 0], sizes = [8, 128], strides = [1, 1]} : vector<8x256xf32> to vector<8x128xf32>
    %c2 = arith.constant 2 : index
    %c0_15 = arith.constant 0 : index
    %c0_16 = arith.constant 0 : index
    %66 = vector.load %arg1[%c2, %c0_15, %c0_16] : memref<8x8x128xf32, #tpu.memory_space<vmem>>, vector<1x8x128xf32>
    %67 = vector.shape_cast %66 : vector<1x8x128xf32> to vector<8x128xf32>
    %68 = arith.addf %65, %67 : vector<8x128xf32>
    %69 = vector.extract_strided_slice %64 {offsets = [0, 128], sizes = [8, 128], strides = [1, 1]} : vector<8x256xf32> to vector<8x128xf32>
    %70 = vector.broadcast %1 : vector<1x128xf32> to vector<8x128xf32>
    %71 = arith.addf %69, %70 : vector<8x128xf32>
    %72 = arith.mulf %71, %10 : vector<8x128xf32>
    %73 = math.tanh %72 : vector<8x128xf32>
    %74 = arith.mulf %73, %10 : vector<8x128xf32>
    %75 = arith.addf %74, %13 : vector<8x128xf32>
    %76 = vector.extract_strided_slice %75 {offsets = [0, 0], sizes = [8, 32], strides = [1, 1]} : vector<8x128xf32> to vector<8x32xf32>
    %77 = vector.extract_strided_slice %75 {offsets = [0, 32], sizes = [8, 32], strides = [1, 1]} : vector<8x128xf32> to vector<8x32xf32>
    %78 = vector.extract_strided_slice %75 {offsets = [0, 64], sizes = [8, 32], strides = [1, 1]} : vector<8x128xf32> to vector<8x32xf32>
    %79 = vector.extract_strided_slice %75 {offsets = [0, 96], sizes = [8, 32], strides = [1, 1]} : vector<8x128xf32> to vector<8x32xf32>
    %80 = arith.mulf %77, %47 : vector<8x32xf32>
    %81 = arith.mulf %76, %78 : vector<8x32xf32>
    %82 = arith.addf %80, %81 : vector<8x32xf32>
    %83 = math.tanh %82 : vector<8x32xf32>
    %84 = arith.mulf %79, %83 : vector<8x32xf32>
    %85 = arith.mulf %68, %10 : vector<8x128xf32>
    %86 = math.tanh %85 : vector<8x128xf32>
    %87 = arith.mulf %86, %10 : vector<8x128xf32>
    %88 = arith.addf %87, %13 : vector<8x128xf32>
    %89 = vector.extract_strided_slice %88 {offsets = [0, 0], sizes = [8, 32], strides = [1, 1]} : vector<8x128xf32> to vector<8x32xf32>
    %90 = vector.extract_strided_slice %88 {offsets = [0, 32], sizes = [8, 32], strides = [1, 1]} : vector<8x128xf32> to vector<8x32xf32>
    %91 = vector.extract_strided_slice %88 {offsets = [0, 64], sizes = [8, 32], strides = [1, 1]} : vector<8x128xf32> to vector<8x32xf32>
    %92 = vector.extract_strided_slice %88 {offsets = [0, 96], sizes = [8, 32], strides = [1, 1]} : vector<8x128xf32> to vector<8x32xf32>
    %93 = arith.mulf %90, %60 : vector<8x32xf32>
    %94 = arith.mulf %89, %91 : vector<8x32xf32>
    %95 = arith.addf %93, %94 : vector<8x32xf32>
    %96 = math.tanh %95 : vector<8x32xf32>
    %97 = arith.mulf %92, %96 : vector<8x32xf32>
    %98 = tpu.concatenate %97, %84 in 1 : vector<8x32xf32>, vector<8x32xf32> -> vector<8x64xf32>
    %cst_17 = arith.constant dense<0.000000e+00> : vector<8x256xf32>
    %99 = tpu.matmul %98, %0, %cst_17 {dimension_numbers = #tpu.dot_dimension_numbers<[1], [0], [0], [1], [0, 0, 1, 1], [], []>} : vector<8x64xf32>, vector<64x256xf32>, vector<8x256xf32> -> vector<8x256xf32>
    %100 = vector.extract_strided_slice %99 {offsets = [0, 0], sizes = [8, 128], strides = [1, 1]} : vector<8x256xf32> to vector<8x128xf32>
    %c3 = arith.constant 3 : index
    %c0_18 = arith.constant 0 : index
    %c0_19 = arith.constant 0 : index
    %101 = vector.load %arg1[%c3, %c0_18, %c0_19] : memref<8x8x128xf32, #tpu.memory_space<vmem>>, vector<1x8x128xf32>
    %102 = vector.shape_cast %101 : vector<1x8x128xf32> to vector<8x128xf32>
    %103 = arith.addf %100, %102 : vector<8x128xf32>
    %104 = vector.extract_strided_slice %99 {offsets = [0, 128], sizes = [8, 128], strides = [1, 1]} : vector<8x256xf32> to vector<8x128xf32>
    %105 = vector.broadcast %1 : vector<1x128xf32> to vector<8x128xf32>
    %106 = arith.addf %104, %105 : vector<8x128xf32>
    %107 = arith.mulf %106, %10 : vector<8x128xf32>
    %108 = math.tanh %107 : vector<8x128xf32>
    %109 = arith.mulf %108, %10 : vector<8x128xf32>
    %110 = arith.addf %109, %13 : vector<8x128xf32>
    %111 = vector.extract_strided_slice %110 {offsets = [0, 0], sizes = [8, 32], strides = [1, 1]} : vector<8x128xf32> to vector<8x32xf32>
    %112 = vector.extract_strided_slice %110 {offsets = [0, 32], sizes = [8, 32], strides = [1, 1]} : vector<8x128xf32> to vector<8x32xf32>
    %113 = vector.extract_strided_slice %110 {offsets = [0, 64], sizes = [8, 32], strides = [1, 1]} : vector<8x128xf32> to vector<8x32xf32>
    %114 = vector.extract_strided_slice %110 {offsets = [0, 96], sizes = [8, 32], strides = [1, 1]} : vector<8x128xf32> to vector<8x32xf32>
    %115 = arith.mulf %112, %82 : vector<8x32xf32>
    %116 = arith.mulf %111, %113 : vector<8x32xf32>
    %117 = arith.addf %115, %116 : vector<8x32xf32>
    %118 = math.tanh %117 : vector<8x32xf32>
    %119 = arith.mulf %114, %118 : vector<8x32xf32>
    %120 = arith.mulf %103, %10 : vector<8x128xf32>
    %121 = math.tanh %120 : vector<8x128xf32>
    %122 = arith.mulf %121, %10 : vector<8x128xf32>
    %123 = arith.addf %122, %13 : vector<8x128xf32>
    %124 = vector.extract_strided_slice %123 {offsets = [0, 0], sizes = [8, 32], strides = [1, 1]} : vector<8x128xf32> to vector<8x32xf32>
    %125 = vector.extract_strided_slice %123 {offsets = [0, 32], sizes = [8, 32], strides = [1, 1]} : vector<8x128xf32> to vector<8x32xf32>
    %126 = vector.extract_strided_slice %123 {offsets = [0, 64], sizes = [8, 32], strides = [1, 1]} : vector<8x128xf32> to vector<8x32xf32>
    %127 = vector.extract_strided_slice %123 {offsets = [0, 96], sizes = [8, 32], strides = [1, 1]} : vector<8x128xf32> to vector<8x32xf32>
    %128 = arith.mulf %125, %95 : vector<8x32xf32>
    %129 = arith.mulf %124, %126 : vector<8x32xf32>
    %130 = arith.addf %128, %129 : vector<8x32xf32>
    %131 = math.tanh %130 : vector<8x32xf32>
    %132 = arith.mulf %127, %131 : vector<8x32xf32>
    %133 = tpu.concatenate %132, %119 in 1 : vector<8x32xf32>, vector<8x32xf32> -> vector<8x64xf32>
    %cst_20 = arith.constant dense<0.000000e+00> : vector<8x256xf32>
    %134 = tpu.matmul %133, %0, %cst_20 {dimension_numbers = #tpu.dot_dimension_numbers<[1], [0], [0], [1], [0, 0, 1, 1], [], []>} : vector<8x64xf32>, vector<64x256xf32>, vector<8x256xf32> -> vector<8x256xf32>
    %135 = vector.extract_strided_slice %134 {offsets = [0, 0], sizes = [8, 128], strides = [1, 1]} : vector<8x256xf32> to vector<8x128xf32>
    %c4 = arith.constant 4 : index
    %c0_21 = arith.constant 0 : index
    %c0_22 = arith.constant 0 : index
    %136 = vector.load %arg1[%c4, %c0_21, %c0_22] : memref<8x8x128xf32, #tpu.memory_space<vmem>>, vector<1x8x128xf32>
    %137 = vector.shape_cast %136 : vector<1x8x128xf32> to vector<8x128xf32>
    %138 = arith.addf %135, %137 : vector<8x128xf32>
    %139 = vector.extract_strided_slice %134 {offsets = [0, 128], sizes = [8, 128], strides = [1, 1]} : vector<8x256xf32> to vector<8x128xf32>
    %140 = vector.broadcast %1 : vector<1x128xf32> to vector<8x128xf32>
    %141 = arith.addf %139, %140 : vector<8x128xf32>
    %142 = arith.mulf %141, %10 : vector<8x128xf32>
    %143 = math.tanh %142 : vector<8x128xf32>
    %144 = arith.mulf %143, %10 : vector<8x128xf32>
    %145 = arith.addf %144, %13 : vector<8x128xf32>
    %146 = vector.extract_strided_slice %145 {offsets = [0, 0], sizes = [8, 32], strides = [1, 1]} : vector<8x128xf32> to vector<8x32xf32>
    %147 = vector.extract_strided_slice %145 {offsets = [0, 32], sizes = [8, 32], strides = [1, 1]} : vector<8x128xf32> to vector<8x32xf32>
    %148 = vector.extract_strided_slice %145 {offsets = [0, 64], sizes = [8, 32], strides = [1, 1]} : vector<8x128xf32> to vector<8x32xf32>
    %149 = vector.extract_strided_slice %145 {offsets = [0, 96], sizes = [8, 32], strides = [1, 1]} : vector<8x128xf32> to vector<8x32xf32>
    %150 = arith.mulf %147, %117 : vector<8x32xf32>
    %151 = arith.mulf %146, %148 : vector<8x32xf32>
    %152 = arith.addf %150, %151 : vector<8x32xf32>
    %153 = math.tanh %152 : vector<8x32xf32>
    %154 = arith.mulf %149, %153 : vector<8x32xf32>
    %155 = arith.mulf %138, %10 : vector<8x128xf32>
    %156 = math.tanh %155 : vector<8x128xf32>
    %157 = arith.mulf %156, %10 : vector<8x128xf32>
    %158 = arith.addf %157, %13 : vector<8x128xf32>
    %159 = vector.extract_strided_slice %158 {offsets = [0, 0], sizes = [8, 32], strides = [1, 1]} : vector<8x128xf32> to vector<8x32xf32>
    %160 = vector.extract_strided_slice %158 {offsets = [0, 32], sizes = [8, 32], strides = [1, 1]} : vector<8x128xf32> to vector<8x32xf32>
    %161 = vector.extract_strided_slice %158 {offsets = [0, 64], sizes = [8, 32], strides = [1, 1]} : vector<8x128xf32> to vector<8x32xf32>
    %162 = vector.extract_strided_slice %158 {offsets = [0, 96], sizes = [8, 32], strides = [1, 1]} : vector<8x128xf32> to vector<8x32xf32>
    %163 = arith.mulf %160, %130 : vector<8x32xf32>
    %164 = arith.mulf %159, %161 : vector<8x32xf32>
    %165 = arith.addf %163, %164 : vector<8x32xf32>
    %166 = math.tanh %165 : vector<8x32xf32>
    %167 = arith.mulf %162, %166 : vector<8x32xf32>
    %168 = tpu.concatenate %167, %154 in 1 : vector<8x32xf32>, vector<8x32xf32> -> vector<8x64xf32>
    %cst_23 = arith.constant dense<0.000000e+00> : vector<8x256xf32>
    %169 = tpu.matmul %168, %0, %cst_23 {dimension_numbers = #tpu.dot_dimension_numbers<[1], [0], [0], [1], [0, 0, 1, 1], [], []>} : vector<8x64xf32>, vector<64x256xf32>, vector<8x256xf32> -> vector<8x256xf32>
    %170 = vector.extract_strided_slice %169 {offsets = [0, 0], sizes = [8, 128], strides = [1, 1]} : vector<8x256xf32> to vector<8x128xf32>
    %c5 = arith.constant 5 : index
    %c0_24 = arith.constant 0 : index
    %c0_25 = arith.constant 0 : index
    %171 = vector.load %arg1[%c5, %c0_24, %c0_25] : memref<8x8x128xf32, #tpu.memory_space<vmem>>, vector<1x8x128xf32>
    %172 = vector.shape_cast %171 : vector<1x8x128xf32> to vector<8x128xf32>
    %173 = arith.addf %170, %172 : vector<8x128xf32>
    %174 = vector.extract_strided_slice %169 {offsets = [0, 128], sizes = [8, 128], strides = [1, 1]} : vector<8x256xf32> to vector<8x128xf32>
    %175 = vector.broadcast %1 : vector<1x128xf32> to vector<8x128xf32>
    %176 = arith.addf %174, %175 : vector<8x128xf32>
    %177 = arith.mulf %176, %10 : vector<8x128xf32>
    %178 = math.tanh %177 : vector<8x128xf32>
    %179 = arith.mulf %178, %10 : vector<8x128xf32>
    %180 = arith.addf %179, %13 : vector<8x128xf32>
    %181 = vector.extract_strided_slice %180 {offsets = [0, 0], sizes = [8, 32], strides = [1, 1]} : vector<8x128xf32> to vector<8x32xf32>
    %182 = vector.extract_strided_slice %180 {offsets = [0, 32], sizes = [8, 32], strides = [1, 1]} : vector<8x128xf32> to vector<8x32xf32>
    %183 = vector.extract_strided_slice %180 {offsets = [0, 64], sizes = [8, 32], strides = [1, 1]} : vector<8x128xf32> to vector<8x32xf32>
    %184 = vector.extract_strided_slice %180 {offsets = [0, 96], sizes = [8, 32], strides = [1, 1]} : vector<8x128xf32> to vector<8x32xf32>
    %185 = arith.mulf %182, %152 : vector<8x32xf32>
    %186 = arith.mulf %181, %183 : vector<8x32xf32>
    %187 = arith.addf %185, %186 : vector<8x32xf32>
    %188 = math.tanh %187 : vector<8x32xf32>
    %189 = arith.mulf %184, %188 : vector<8x32xf32>
    %190 = arith.mulf %173, %10 : vector<8x128xf32>
    %191 = math.tanh %190 : vector<8x128xf32>
    %192 = arith.mulf %191, %10 : vector<8x128xf32>
    %193 = arith.addf %192, %13 : vector<8x128xf32>
    %194 = vector.extract_strided_slice %193 {offsets = [0, 0], sizes = [8, 32], strides = [1, 1]} : vector<8x128xf32> to vector<8x32xf32>
    %195 = vector.extract_strided_slice %193 {offsets = [0, 32], sizes = [8, 32], strides = [1, 1]} : vector<8x128xf32> to vector<8x32xf32>
    %196 = vector.extract_strided_slice %193 {offsets = [0, 64], sizes = [8, 32], strides = [1, 1]} : vector<8x128xf32> to vector<8x32xf32>
    %197 = vector.extract_strided_slice %193 {offsets = [0, 96], sizes = [8, 32], strides = [1, 1]} : vector<8x128xf32> to vector<8x32xf32>
    %198 = arith.mulf %195, %165 : vector<8x32xf32>
    %199 = arith.mulf %194, %196 : vector<8x32xf32>
    %200 = arith.addf %198, %199 : vector<8x32xf32>
    %201 = math.tanh %200 : vector<8x32xf32>
    %202 = arith.mulf %197, %201 : vector<8x32xf32>
    %203 = tpu.concatenate %202, %189 in 1 : vector<8x32xf32>, vector<8x32xf32> -> vector<8x64xf32>
    %cst_26 = arith.constant dense<0.000000e+00> : vector<8x256xf32>
    %204 = tpu.matmul %203, %0, %cst_26 {dimension_numbers = #tpu.dot_dimension_numbers<[1], [0], [0], [1], [0, 0, 1, 1], [], []>} : vector<8x64xf32>, vector<64x256xf32>, vector<8x256xf32> -> vector<8x256xf32>
    %205 = vector.extract_strided_slice %204 {offsets = [0, 0], sizes = [8, 128], strides = [1, 1]} : vector<8x256xf32> to vector<8x128xf32>
    %c6 = arith.constant 6 : index
    %c0_27 = arith.constant 0 : index
    %c0_28 = arith.constant 0 : index
    %206 = vector.load %arg1[%c6, %c0_27, %c0_28] : memref<8x8x128xf32, #tpu.memory_space<vmem>>, vector<1x8x128xf32>
    %207 = vector.shape_cast %206 : vector<1x8x128xf32> to vector<8x128xf32>
    %208 = arith.addf %205, %207 : vector<8x128xf32>
    %209 = vector.extract_strided_slice %204 {offsets = [0, 128], sizes = [8, 128], strides = [1, 1]} : vector<8x256xf32> to vector<8x128xf32>
    %210 = vector.broadcast %1 : vector<1x128xf32> to vector<8x128xf32>
    %211 = arith.addf %209, %210 : vector<8x128xf32>
    %212 = arith.mulf %211, %10 : vector<8x128xf32>
    %213 = math.tanh %212 : vector<8x128xf32>
    %214 = arith.mulf %213, %10 : vector<8x128xf32>
    %215 = arith.addf %214, %13 : vector<8x128xf32>
    %216 = vector.extract_strided_slice %215 {offsets = [0, 0], sizes = [8, 32], strides = [1, 1]} : vector<8x128xf32> to vector<8x32xf32>
    %217 = vector.extract_strided_slice %215 {offsets = [0, 32], sizes = [8, 32], strides = [1, 1]} : vector<8x128xf32> to vector<8x32xf32>
    %218 = vector.extract_strided_slice %215 {offsets = [0, 64], sizes = [8, 32], strides = [1, 1]} : vector<8x128xf32> to vector<8x32xf32>
    %219 = vector.extract_strided_slice %215 {offsets = [0, 96], sizes = [8, 32], strides = [1, 1]} : vector<8x128xf32> to vector<8x32xf32>
    %220 = arith.mulf %217, %187 : vector<8x32xf32>
    %221 = arith.mulf %216, %218 : vector<8x32xf32>
    %222 = arith.addf %220, %221 : vector<8x32xf32>
    %223 = math.tanh %222 : vector<8x32xf32>
    %224 = arith.mulf %219, %223 : vector<8x32xf32>
    %225 = arith.mulf %208, %10 : vector<8x128xf32>
    %226 = math.tanh %225 : vector<8x128xf32>
    %227 = arith.mulf %226, %10 : vector<8x128xf32>
    %228 = arith.addf %227, %13 : vector<8x128xf32>
    %229 = vector.extract_strided_slice %228 {offsets = [0, 0], sizes = [8, 32], strides = [1, 1]} : vector<8x128xf32> to vector<8x32xf32>
    %230 = vector.extract_strided_slice %228 {offsets = [0, 32], sizes = [8, 32], strides = [1, 1]} : vector<8x128xf32> to vector<8x32xf32>
    %231 = vector.extract_strided_slice %228 {offsets = [0, 64], sizes = [8, 32], strides = [1, 1]} : vector<8x128xf32> to vector<8x32xf32>
    %232 = vector.extract_strided_slice %228 {offsets = [0, 96], sizes = [8, 32], strides = [1, 1]} : vector<8x128xf32> to vector<8x32xf32>
    %233 = arith.mulf %230, %200 : vector<8x32xf32>
    %234 = arith.mulf %229, %231 : vector<8x32xf32>
    %235 = arith.addf %233, %234 : vector<8x32xf32>
    %236 = math.tanh %235 : vector<8x32xf32>
    %237 = arith.mulf %232, %236 : vector<8x32xf32>
    %238 = tpu.concatenate %237, %224 in 1 : vector<8x32xf32>, vector<8x32xf32> -> vector<8x64xf32>
    %cst_29 = arith.constant dense<0.000000e+00> : vector<8x256xf32>
    %239 = tpu.matmul %238, %0, %cst_29 {dimension_numbers = #tpu.dot_dimension_numbers<[1], [0], [0], [1], [0, 0, 1, 1], [], []>} : vector<8x64xf32>, vector<64x256xf32>, vector<8x256xf32> -> vector<8x256xf32>
    %240 = vector.extract_strided_slice %239 {offsets = [0, 0], sizes = [8, 128], strides = [1, 1]} : vector<8x256xf32> to vector<8x128xf32>
    %c7 = arith.constant 7 : index
    %c0_30 = arith.constant 0 : index
    %c0_31 = arith.constant 0 : index
    %241 = vector.load %arg1[%c7, %c0_30, %c0_31] : memref<8x8x128xf32, #tpu.memory_space<vmem>>, vector<1x8x128xf32>
    %242 = vector.shape_cast %241 : vector<1x8x128xf32> to vector<8x128xf32>
    %243 = arith.addf %240, %242 : vector<8x128xf32>
    %244 = vector.extract_strided_slice %239 {offsets = [0, 128], sizes = [8, 128], strides = [1, 1]} : vector<8x256xf32> to vector<8x128xf32>
    %245 = vector.broadcast %1 : vector<1x128xf32> to vector<8x128xf32>
    %246 = arith.addf %244, %245 : vector<8x128xf32>
    %247 = arith.mulf %246, %10 : vector<8x128xf32>
    %248 = math.tanh %247 : vector<8x128xf32>
    %249 = arith.mulf %248, %10 : vector<8x128xf32>
    %250 = arith.addf %249, %13 : vector<8x128xf32>
    %251 = vector.extract_strided_slice %250 {offsets = [0, 0], sizes = [8, 32], strides = [1, 1]} : vector<8x128xf32> to vector<8x32xf32>
    %252 = vector.extract_strided_slice %250 {offsets = [0, 32], sizes = [8, 32], strides = [1, 1]} : vector<8x128xf32> to vector<8x32xf32>
    %253 = vector.extract_strided_slice %250 {offsets = [0, 64], sizes = [8, 32], strides = [1, 1]} : vector<8x128xf32> to vector<8x32xf32>
    %254 = vector.extract_strided_slice %250 {offsets = [0, 96], sizes = [8, 32], strides = [1, 1]} : vector<8x128xf32> to vector<8x32xf32>
    %255 = arith.mulf %252, %222 : vector<8x32xf32>
    %256 = arith.mulf %251, %253 : vector<8x32xf32>
    %257 = arith.addf %255, %256 : vector<8x32xf32>
    %258 = math.tanh %257 : vector<8x32xf32>
    %259 = arith.mulf %254, %258 : vector<8x32xf32>
    %260 = arith.mulf %243, %10 : vector<8x128xf32>
    %261 = math.tanh %260 : vector<8x128xf32>
    %262 = arith.mulf %261, %10 : vector<8x128xf32>
    %263 = arith.addf %262, %13 : vector<8x128xf32>
    %264 = vector.extract_strided_slice %263 {offsets = [0, 0], sizes = [8, 32], strides = [1, 1]} : vector<8x128xf32> to vector<8x32xf32>
    %265 = vector.extract_strided_slice %263 {offsets = [0, 32], sizes = [8, 32], strides = [1, 1]} : vector<8x128xf32> to vector<8x32xf32>
    %266 = vector.extract_strided_slice %263 {offsets = [0, 64], sizes = [8, 32], strides = [1, 1]} : vector<8x128xf32> to vector<8x32xf32>
    %267 = vector.extract_strided_slice %263 {offsets = [0, 96], sizes = [8, 32], strides = [1, 1]} : vector<8x128xf32> to vector<8x32xf32>
    %268 = arith.mulf %265, %235 : vector<8x32xf32>
    %269 = arith.mulf %264, %266 : vector<8x32xf32>
    %270 = arith.addf %268, %269 : vector<8x32xf32>
    %271 = math.tanh %270 : vector<8x32xf32>
    %272 = arith.mulf %267, %271 : vector<8x32xf32>
    %273 = tpu.concatenate %272, %259 in 1 : vector<8x32xf32>, vector<8x32xf32> -> vector<8x64xf32>
    %cst_32 = arith.constant dense<0.000000e+00> : vector<8x256xf32>
    %274 = tpu.matmul %273, %0, %cst_32 {dimension_numbers = #tpu.dot_dimension_numbers<[1], [0], [0], [1], [0, 0, 1, 1], [], []>} : vector<8x64xf32>, vector<64x256xf32>, vector<8x256xf32> -> vector<8x256xf32>
    %275 = vector.extract_strided_slice %274 {offsets = [0, 128], sizes = [8, 128], strides = [1, 1]} : vector<8x256xf32> to vector<8x128xf32>
    %276 = vector.broadcast %1 : vector<1x128xf32> to vector<8x128xf32>
    %277 = arith.addf %275, %276 : vector<8x128xf32>
    %278 = arith.mulf %277, %10 : vector<8x128xf32>
    %279 = math.tanh %278 : vector<8x128xf32>
    %280 = arith.mulf %279, %10 : vector<8x128xf32>
    %281 = arith.addf %280, %13 : vector<8x128xf32>
    %282 = vector.extract_strided_slice %281 {offsets = [0, 0], sizes = [8, 32], strides = [1, 1]} : vector<8x128xf32> to vector<8x32xf32>
    %283 = vector.extract_strided_slice %281 {offsets = [0, 32], sizes = [8, 32], strides = [1, 1]} : vector<8x128xf32> to vector<8x32xf32>
    %284 = vector.extract_strided_slice %281 {offsets = [0, 64], sizes = [8, 32], strides = [1, 1]} : vector<8x128xf32> to vector<8x32xf32>
    %285 = vector.extract_strided_slice %281 {offsets = [0, 96], sizes = [8, 32], strides = [1, 1]} : vector<8x128xf32> to vector<8x32xf32>
    %286 = arith.mulf %283, %257 : vector<8x32xf32>
    %287 = arith.mulf %282, %284 : vector<8x32xf32>
    %288 = arith.addf %286, %287 : vector<8x32xf32>
    %289 = math.tanh %288 : vector<8x32xf32>
    %290 = arith.mulf %285, %289 : vector<8x32xf32>
    %c0_33 = arith.constant 0 : index
    %c0_34 = arith.constant 0 : index
    %291 = vector.load %arg4[%c0_33, %c0_34] : memref<32x1xf32, #tpu.memory_space<vmem>>, vector<32x1xf32>
    %cst_35 = arith.constant dense<0.000000e+00> : vector<8x1xf32>
    %292 = tpu.matmul %290, %291, %cst_35 {dimension_numbers = #tpu.dot_dimension_numbers<[1], [0], [0], [1], [0, 0, 1, 1], [], []>} : vector<8x32xf32>, vector<32x1xf32>, vector<8x1xf32> -> vector<8x1xf32>
    %c0_36 = arith.constant 0 : index
    %c0_37 = arith.constant 0 : index
    %293 = vector.load %arg5[%c0_36, %c0_37] : memref<1x1xf32, #tpu.memory_space<vmem>>, vector<1x1xf32>
    %294 = vector.broadcast %293 : vector<1x1xf32> to vector<8x1xf32>
    %295 = arith.addf %292, %294 : vector<8x1xf32>
    %c0_38 = arith.constant 0 : index
    %c0_39 = arith.constant 0 : index
    %296 = vector.load %arg6[%c0_38, %c0_39] : memref<8x1xf32, #tpu.memory_space<vmem>>, vector<8x1xf32>
    tpu.vector_store %arg6[%c0_38, %c0_39], %295 {strides = array<i32>} : memref<8x1xf32, #tpu.memory_space<vmem>>, vector<8x1xf32>,
    return
  }
  func.func @transform_0(%arg0: i32) -> (i32, i32, i32) {
    %c0_i32 = arith.constant 0 : i32
    %c0_i32_0 = arith.constant 0 : i32
    %c0_i32_1 = arith.constant 0 : i32
    return %c0_i32, %arg0, %c0_i32_0 : i32, i32, i32
  }
  func.func @transform_1(%arg0: i32) -> (i32, i32) {
    %c0_i32 = arith.constant 0 : i32
    %c0_i32_0 = arith.constant 0 : i32
    %c0_i32_1 = arith.constant 0 : i32
    return %c0_i32, %c0_i32_0 : i32, i32
  }
  func.func @transform_2(%arg0: i32) -> (i32, i32) {
    %c0_i32 = arith.constant 0 : i32
    %c0_i32_0 = arith.constant 0 : i32
    %c0_i32_1 = arith.constant 0 : i32
    return %c0_i32, %c0_i32_0 : i32, i32
  }
  func.func @transform_3(%arg0: i32) -> (i32, i32) {
    %c0_i32 = arith.constant 0 : i32
    %c0_i32_0 = arith.constant 0 : i32
    %c0_i32_1 = arith.constant 0 : i32
    return %c0_i32, %c0_i32_0 : i32, i32
  }
  func.func @transform_4(%arg0: i32) -> (i32, i32) {
    %c0_i32 = arith.constant 0 : i32
    %c0_i32_0 = arith.constant 0 : i32
    %c0_i32_1 = arith.constant 0 : i32
    return %c0_i32, %c0_i32_0 : i32, i32
  }
  func.func @transform_5(%arg0: i32) -> (i32, i32) {
    %c0_i32 = arith.constant 0 : i32
    %c0_i32_0 = arith.constant 0 : i32
    return %arg0, %c0_i32 : i32, i32
  }
}

</mosaic_0001>

<bundles_post_ra>
// kernel: tpu_custom_call.1
= control target key start
LH: loop header
LB: loop body
LE: loop exit
PB: predicated region body
PF: predicated region fallthrough
CT: control target
= control target key end

     0   :  { %s1739_s0 = inlined_call_operand.hbm [shape: f32[8,8,128], index: 0, kind: input, shape index: {}]   ;;  %s1740_s1 = inlined_call_operand.hbm [shape: f32[64,256], index: 1, kind: input, shape index: {}]   ;;  %s1741_s2 = inlined_call_operand.vmem [shape: f32[1,128], index: 2, kind: input, shape index: {}]   ;;  %s1742_s3 = inlined_call_operand.vmem [shape: f32[32,1], index: 3, kind: input, shape index: {}]   ;;  %s1743_s4 = inlined_call_operand.<no memory space> [shape: f32[1,1], index: 4, kind: input, shape index: {}]   ;;  %s1744_s5 = inlined_call_operand.vmem [shape: f32[8,1], index: 5, kind: output, shape index: {}]  }
   0x1   :  { %v10_v0 = vstv %s1743_s4 }
   0x2   :  { %11 = vst [vmem:[#allocation2] sm:$0x1] %v10_v0 }
   0x3   :  { %12 = vsyncpa [#allocation4], 0 }
   0x4   :  { %13 = vsyncpa [#allocation6], 0  ;;  %s1346_s20 = smov [#allocation3]  }
   0x5   :  { %s19_s21 = sshll.u32 %s1346_s20, 4  ;;  %s20_s21 = int_to_ptr.vmem [resolvable:$true] %s19_s21 }
   0x6   :  { %s1310_s22 = scalar_lea.vmem %s20_s21, 1024  ;;  %p1315_p1 = scmp.lt.s32.totalorder %s20_s21, %s20_s21 }
   0x7   :  { %p1311_p0 = scmp.ne.s32.totalorder %s20_s21, %s1310_s22  ;;  %p1316_p2 = scmp.lt.s32.totalorder %s1310_s22, %s1310_s22 }
   0x9   :  { %p1317_p3 = por %p1316_p2, %p1315_p1 }
   0xb   :  { %p1318_p4 = pnand %p1317_p3, %p1311_p0 }
   0xd   :  { %1321 = shalt.err (!%p1318_p4)
}
   0xe   :  { %s1347_s23 = smov 128   ;;  %s1348_s24 = smov 8  }
   0xf   :  { %25 = dma.hbm_to_vmem [thread:$0]  %s1739_s0, 1024, %s20_s21, [#allocation4], %s1347_s23, %s1347_s23, %s1348_s24  }
  0x10   :  { %s1349_s4 = smov [#allocation5]  }
  0x11   :  { %s31_s27 = sshll.u32 %s1349_s4, 4  ;;  %s32_s27 = int_to_ptr.vmem [resolvable:$true] %s31_s27 }
  0x12   :  { %s1330_s28 = scalar_lea.vmem %s32_s27, 2048  ;;  %p1335_p6 = scmp.lt.s32.totalorder %s32_s27, %s32_s27 }
  0x13   :  { %p1331_p5 = scmp.ne.s32.totalorder %s32_s27, %s1330_s28  ;;  %p1336_p7 = scmp.lt.s32.totalorder %s1330_s28, %s1330_s28 }
  0x15   :  { %p1337_p8 = por %p1336_p7, %p1335_p6 }
  0x17   :  { %p1338_p9 = pnand %p1337_p8, %p1331_p5 }
  0x19   :  { %1341 = shalt.err (!%p1338_p9)
}
  0x1a   :  { %s1350_s29 = smov 256   ;;  %s1351_s30 = smov 16  }
  0x1b   :  { %37 = dma.hbm_to_vmem [thread:$0]  %s1740_s1, 2048, %s32_s27, [#allocation6], %s1350_s29, %s1350_s29, %s1351_s30  }
  0x1c   :  { %1342 = dma.done.wait [#allocation4], 1024  }
  0x1d   :  { %1343 = vsyncadd [#allocation4], 4294966272 }
  0x1e   :  { %1344 = dma.done.wait [#allocation6], 2048  }
  0x1f   :  { %1345 = vsyncadd [#allocation6], 4294965248  ;;  %v67_v1 = vlaneseq  ;;  %v1352_v3 = vmov 0.5   ;;  %v74_v5 = vld [vmem:[#allocation3] sm:$0xff]  ;;  %s1353_s0 = smov 64   ;;  %v1412_v13 = vld [vmem:[#allocation5 + $0x78] sm:$0xff] }
  0x20   :  { %v1414_v14 = vld [vmem:[#allocation5 + $0x70] sm:$0xff]  ;;  %v1416_v15 = vld [vmem:[#allocation5 + $0x68] sm:$0xff]  ;;  %116 = vmatprep.subr.mxu0 %v1412_v13  ;;  %v1419_v16 = vld [vmem:[#allocation5 + $0x60] sm:$0xff]  ;;  %255 = vmatprep.subr.mxu1 %v1412_v13  ;;  %s1354_s1 = smov 96   ;;  %v1355_v30 = vmov 0.0   ;;  %s1356_s8 = smov 32  }
  0x21   :  { %v68_v2 = vand.u32 127, %v67_v1  ;;  %117 = vmatpush1.msra.mxu0 %v1414_v14  ;;  %v1423_v17 = vld [vmem:[#allocation5 + $0x58] sm:$0xff]  ;;  %256 = vmatpush1.msra.mxu1 %v1414_v14  ;;  %v1427_v18 = vld [vmem:[#allocation5 + $0x50] sm:$0xff]  ;;  %v1431_v19 = vld [vmem:[#allocation5 + $0x48] sm:$0xff]  ;;  %vm94_vm3 = vcmask 261120   ;;  %vm96_vm4 = vcmask 523264  }
  0x22   :  { %118 = vmatprep.subr.mxu0 %v1416_v15  ;;  %257 = vmatprep.subr.mxu1 %v1416_v15  ;;  %v1435_v20 = vld [vmem:[#allocation5 + $0x40] sm:$0xff]  ;;  %v1439_v21 = vld [vmem:[#allocation5 + $0x38] sm:$0xff]  ;;  %v1443_v22 = vld [vmem:[#allocation5 + $0x30] sm:$0xff]  ;;  %vm1357_vm5 = vmmov 0   ;;  %vm1191_vm6 = vcmask 7168  }
  0x23   :  { %vm69_vm0 = vcmp.ge.s32.totalorder %v68_v2, 64  ;;  %vm70_vm1 = vcmp.lt.s32.totalorder %v68_v2, 96  ;;  %119 = vmatpush1.msra.mxu0 %v1419_v16  ;;  %258 = vmatpush1.msra.mxu1 %v1419_v16  ;;  %v1447_v23 = vld [vmem:[#allocation5 + $0x28] sm:$0xff]  ;;  %v1451_v24 = vld [vmem:[#allocation5 + $0x20] sm:$0xff]  ;;  %v1455_v26 = vld [vmem:[#allocation5 + $0x18] sm:$0xff] }
  0x24   :  { %vm71_vm2 = vmand %vm69_vm0, %vm70_vm1  ;;  %120 = vmatprep.subr.mxu0 %v1423_v17  ;;  %259 = vmatprep.subr.mxu1 %v1423_v17  ;;  %v1459_v27 = vld [vmem:[#allocation5 + $0x10] sm:$0xff]  ;;  %v1468_v28 = vld [vmem:[#allocation5 + $0x8] sm:$0xff] }
  0x25   :  { %v1397_v4 = vsel %vm71_vm2, 1.0, %v1352_v3  ;;  %v1400_v8 = vsel %vm71_vm2, 0.0, %v1352_v3  ;;  %121 = vmatpush1.msra.mxu0 %v1427_v18  ;;  %260 = vmatpush1.msra.mxu1 %v1427_v18  ;;  %v1471_v29 = vld [vmem:[#allocation5] sm:$0xff]  ;;  %v172_v35 = vld [vmem:[#allocation3 + $0x8] sm:$0xff]  ;;  %v1504_v37 = vld [vmem:[%s1741_s2] ss:$0 sm:$0xff] }
  0x26   :  { %v75_v6 = vmul.f32 %v74_v5, %v1397_v4  ;;  %122 = vmatprep.subr.mxu0 %v1431_v19  ;;  %261 = vmatprep.subr.mxu1 %v1431_v19 }
  0x27   :  { %123 = vmatpush1.msra.mxu0 %v1435_v20  ;;  %262 = vmatpush1.msra.mxu1 %v1435_v20 }
  0x28   :  { %1238 = vtanh.f32 %v75_v6  ;;  %124 = vmatprep.subr.mxu0 %v1439_v21  ;;  %263 = vmatprep.subr.mxu1 %v1439_v21  ;;  %v311_v6 = vld [vmem:[#allocation3 + $0x10] sm:$0xff] }
  0x29   :  { %125 = vmatpush1.msra.mxu0 %v1443_v22  ;;  %264 = vmatpush1.msra.mxu1 %v1443_v22 }
  0x2a   :  { %126 = vmatprep.subr.mxu0 %v1447_v23  ;;  %265 = vmatprep.subr.mxu1 %v1447_v23 }
  0x2b   :  { %127 = vmatpush1.msra.mxu0 %v1451_v24  ;;  %266 = vmatpush1.msra.mxu1 %v1451_v24 }
  0x2c   :  { %128 = vmatprep.subr.mxu0 %v1455_v26  ;;  %267 = vmatprep.subr.mxu1 %v1455_v26 }
  0x2d   :  { %129 = vmatpush1.msra.mxu0 %v1459_v27  ;;  %268 = vmatpush1.msra.mxu1 %v1459_v27 }
  0x2e   :  { %130 = vmatprep.subr.mxu0 %v1468_v28  ;;  %269 = vmatprep.subr.mxu1 %v1468_v28 }
  0x2f   :  { %131 = vmatpush1.msra.mxu0 %v1471_v29  ;;  %164 = vmatprep.mubr.f32.mxu0 %v1355_v30 }
  0x30   :  { %270 = vmatpush1.msra.mxu1 %v1471_v29  ;;  %303 = vmatprep.mubr.f32.mxu1 %v1355_v30 }
  0x31   :  { %384 = vmatprep.subr.mxu0 %v1412_v13  ;;  %513 = vmatprep.subr.mxu1 %v1412_v13 }
  0x35   :  { %v1239_v7 = vpop.eup %1238 }
  0x36   :  { %v77_v9 = vmul.f32 %v1239_v7, %v1397_v4 }
  0x38   :  { %v1404_v10 = vadd.f32 %v77_v9, %v1400_v8 }
  0x3a   :  { %80 = vrot.lane.b32.xlu0 %v1404_v10, %s1353_s0 }
  0xac   :  { %v81_v11 = vpop.permute.xlu0 %80 }
  0xad   :  { %v1409_v12 = vmul.f32 %v81_v11, %v1404_v10 }
  0xaf   :  { %1240 = vtanh.f32 %v1409_v12 }
  0xbc   :  { %v1241_v25 = vpop.eup %1240 }
  0xbd   :  { %86 = vrot.lane.b32.xlu0 %v1241_v25, %s1354_s1 }
 0x12f   :  { %v87_v31 = vpop.permute.xlu0 %86 }
 0x130   :  { %v89_v32 = vmul.f32 %v87_v31, %v1404_v10 }
 0x132   :  { %91 = vrot.lane.b32.xlu1 %v89_v32, %s1356_s8 }
 0x1a4   :  { %v92_v33 = vpop.permute.xlu1 %91 }
 0x1a5   :  { %v95_v34 = vsel %vm94_vm3, %v92_v33, 0.0 }
 0x1a6   :  { %1199 = vmatmul.mubr.msk.f32.vlgmr.msra.gmra.mxu0 %vm96_vm4, %v95_v34 }
 0x1a7   :  { %385 = vmatpush1.msra.mxu0 %v1414_v14  ;;  %432 = vmatprep.mubr.f32.mxu0 %v1355_v30 }
 0x1a8   :  { %386 = vmatprep.subr.mxu0 %v1416_v15 }
 0x1a9   :  { %387 = vmatpush1.msra.mxu0 %v1419_v16 }
 0x1aa   :  { %388 = vmatprep.subr.mxu0 %v1423_v17 }
 0x1ab   :  { %389 = vmatpush1.msra.mxu0 %v1427_v18 }
 0x1ac   :  { %390 = vmatprep.subr.mxu0 %v1431_v19 }
 0x1ad   :  { %391 = vmatpush1.msra.mxu0 %v1435_v20 }
 0x1ae   :  { %392 = vmatprep.subr.mxu0 %v1439_v21 }
 0x1af   :  { %393 = vmatpush1.msra.mxu0 %v1443_v22 }
 0x1b0   :  { %394 = vmatprep.subr.mxu0 %v1447_v23 }
 0x1b1   :  { %395 = vmatpush1.msra.mxu0 %v1451_v24 }
 0x1b2   :  { %396 = vmatprep.subr.mxu0 %v1455_v26 }
 0x1b3   :  { %397 = vmatpush1.msra.mxu0 %v1459_v27 }
 0x1b4   :  { %398 = vmatprep.subr.mxu0 %v1468_v28 }
 0x1b5   :  { %399 = vmatpush1.msra.mxu0 %v1471_v29 }
 0x1b6   :  { %642 = vmatprep.subr.mxu0 %v1412_v13 }
 0x266   :  { %v166_v36 = vpop.f32.mrf.mxu0 }
 0x267   :  { %v173_v38 = vadd.f32 %v172_v35, %v166_v36 }
 0x268   :  { %v168_v39 = vpop.f32.mrf.mxu0 }
 0x269   :  { %v202_v40 = vmul.f32 %v173_v38, %v1397_v4  ;;  %v180_v41 = vadd.f32 %v1504_v37, %v168_v39 }
 0x26b   :  { %1242 = vtanh.f32 %v202_v40  ;;  %v181_v42 = vmul.f32 %v180_v41, %v1397_v4 }
 0x26d   :  { %1244 = vtanh.f32 %v181_v42 }
 0x278   :  { %v1243_v43 = vpop.eup %1242 }
 0x279   :  { %v204_v44 = vmul.f32 %v1243_v43, %v1397_v4 }
 0x27a   :  { %v1245_v45 = vpop.eup %1244 }
 0x27b   :  { %v205_v46 = vadd.f32 %v204_v44, %v1400_v8  ;;  %v183_v47 = vmul.f32 %v1245_v45, %v1397_v4 }
 0x27d   :  { %212 = vrot.lane.b32.xlu0 %v205_v46, %s1353_s0  ;;  %v184_v48 = vadd.f32 %v183_v47, %v1400_v8 }
 0x27f   :  { %187 = vrot.lane.b32.xlu1 %v184_v48, %s1353_s0  ;;  %v185_v57 = vmul.f32 0.0, %v184_v48 }
 0x283   :  { %207 = vrot.lane.b32.xlu1 %v1409_v12, %s1356_s8 }
 0x2ef   :  { %v213_v49 = vpop.permute.xlu0 %212 }
 0x2f0   :  { %v215_v50 = vmul.f32 %v213_v49, %v205_v46 }
 0x2f1   :  { %v188_v51 = vpop.permute.xlu1 %187 }
 0x2f2   :  { %v190_v52 = vmul.f32 %v188_v51, %v184_v48  ;;  %217 = vrot.lane.b32.xlu1 %v215_v50, %s1356_s8 }
 0x2f4   :  { %192 = vrot.lane.b32.xlu0 %v190_v52, %s1356_s8 }
 0x2f5   :  { %v208_v53 = vpop.permute.xlu1 %207 }
 0x2f6   :  { %v210_v54 = vmul.f32 %v208_v53, %v205_v46 }
 0x364   :  { %v218_v55 = vpop.permute.xlu1 %217 }
 0x365   :  { %v220_v56 = vadd.f32 %v218_v55, %v210_v54 }
 0x366   :  { %v193_v58 = vpop.permute.xlu0 %192 }
 0x367   :  { %1246 = vtanh.f32 %v220_v56  ;;  %v195_v59 = vadd.f32 %v193_v58, %v185_v57  ;;  %v440_v57 = vld [vmem:[#allocation3 + $0x18] sm:$0xff] }
 0x369   :  { %1248 = vtanh.f32 %v195_v59 }
 0x374   :  { %v1247_v60 = vpop.eup %1246 }
 0x375   :  { %223 = vrot.lane.b32.xlu1 %v1247_v60, %s1353_s0 }
 0x376   :  { %v1249_v61 = vpop.eup %1248 }
 0x377   :  { %198 = vrot.lane.b32.xlu0 %v1249_v61, %s1353_s0 }
 0x3e7   :  { %v224_v62 = vpop.permute.xlu1 %223 }
 0x3e8   :  { %v226_v63 = vmul.f32 %v224_v62, %v205_v46 }
 0x3e9   :  { %v199_v0 = vpop.permute.xlu0 %198 }
 0x3ea   :  { %v201_v1 = vmul.f32 %v199_v0, %v184_v48  ;;  %228 = vrot.lane.b32.xlu0 %v226_v63, %s1356_s8 }
 0x3ec   :  { %232 = vrot.lane.b32.xlu1 %v201_v1, %s1353_s0 }
 0x45c   :  { %v229_v2 = vpop.permute.xlu0 %228 }
 0x45e   :  { %v233_v3 = vpop.permute.xlu1 %232 }
 0x45f   :  { %v235_v5 = vsel %vm94_vm3, %v229_v2, %v233_v3 }
 0x460   :  { %1201 = vmatmul.mubr.msk.f32.vlgmr.msra.gmra.mxu1 %vm96_vm4, %v235_v5 }
 0x461   :  { %514 = vmatpush1.msra.mxu1 %v1414_v14  ;;  %561 = vmatprep.mubr.f32.mxu1 %v1355_v30 }
 0x462   :  { %515 = vmatprep.subr.mxu1 %v1416_v15 }
 0x463   :  { %516 = vmatpush1.msra.mxu1 %v1419_v16 }
 0x464   :  { %517 = vmatprep.subr.mxu1 %v1423_v17 }
 0x465   :  { %518 = vmatpush1.msra.mxu1 %v1427_v18 }
 0x466   :  { %519 = vmatprep.subr.mxu1 %v1431_v19 }
 0x467   :  { %520 = vmatpush1.msra.mxu1 %v1435_v20 }
 0x468   :  { %521 = vmatprep.subr.mxu1 %v1439_v21 }
 0x469   :  { %522 = vmatpush1.msra.mxu1 %v1443_v22 }
 0x46a   :  { %523 = vmatprep.subr.mxu1 %v1447_v23 }
 0x46b   :  { %524 = vmatpush1.msra.mxu1 %v1451_v24 }
 0x46c   :  { %525 = vmatprep.subr.mxu1 %v1455_v26 }
 0x46d   :  { %526 = vmatpush1.msra.mxu1 %v1459_v27 }
 0x46e   :  { %527 = vmatprep.subr.mxu1 %v1468_v28 }
 0x46f   :  { %528 = vmatpush1.msra.mxu1 %v1471_v29 }
 0x470   :  { %771 = vmatprep.subr.mxu1 %v1412_v13 }
 0x520   :  { %v305_v7 = vpop.f32.mrf.mxu1 }
 0x521   :  { %v312_v9 = vadd.f32 %v311_v6, %v305_v7 }
 0x522   :  { %v307_v10 = vpop.f32.mrf.mxu1 }
 0x523   :  { %v335_v11 = vmul.f32 %v312_v9, %v1397_v4  ;;  %v313_v12 = vadd.f32 %v1504_v37, %v307_v10 }
 0x525   :  { %1250 = vtanh.f32 %v335_v11  ;;  %v314_v25 = vmul.f32 %v313_v12, %v1397_v4 }
 0x527   :  { %1252 = vtanh.f32 %v314_v25 }
 0x532   :  { %v1251_v31 = vpop.eup %1250 }
 0x533   :  { %v337_v32 = vmul.f32 %v1251_v31, %v1397_v4 }
 0x534   :  { %v1253_v33 = vpop.eup %1252 }
 0x535   :  { %v338_v34 = vadd.f32 %v337_v32, %v1400_v8  ;;  %v316_v35 = vmul.f32 %v1253_v33, %v1397_v4 }
 0x537   :  { %341 = vrot.lane.b32.xlu1 %v338_v34, %s1353_s0  ;;  %v317_v36 = vadd.f32 %v316_v35, %v1400_v8  ;;  %v339_v42 = vmul.f32 %v338_v34, %v220_v56 }
 0x539   :  { %320 = vrot.lane.b32.xlu0 %v317_v36, %s1353_s0  ;;  %v318_v45 = vmul.f32 %v317_v36, %v195_v59 }
 0x5a9   :  { %v342_v38 = vpop.permute.xlu1 %341 }
 0x5aa   :  { %v344_v39 = vmul.f32 %v342_v38, %v338_v34 }
 0x5ab   :  { %v321_v40 = vpop.permute.xlu0 %320 }
 0x5ac   :  { %v323_v41 = vmul.f32 %v321_v40, %v317_v36  ;;  %346 = vrot.lane.b32.xlu1 %v344_v39, %s1356_s8 }
 0x5ae   :  { %325 = vrot.lane.b32.xlu0 %v323_v41, %s1356_s8 }
 0x61e   :  { %v347_v43 = vpop.permute.xlu1 %346 }
 0x61f   :  { %v349_v44 = vadd.f32 %v347_v43, %v339_v42 }
 0x620   :  { %v326_v46 = vpop.permute.xlu0 %325 }
 0x621   :  { %1254 = vtanh.f32 %v349_v44  ;;  %v328_v47 = vadd.f32 %v326_v46, %v318_v45  ;;  %v569_v45 = vld [vmem:[#allocation3 + $0x20] sm:$0xff] }
 0x623   :  { %1256 = vtanh.f32 %v328_v47 }
 0x62e   :  { %v1255_v48 = vpop.eup %1254 }
 0x62f   :  { %352 = vrot.lane.b32.xlu1 %v1255_v48, %s1353_s0 }
 0x630   :  { %v1257_v49 = vpop.eup %1256 }
 0x631   :  { %331 = vrot.lane.b32.xlu0 %v1257_v49, %s1353_s0 }
 0x6a1   :  { %v353_v50 = vpop.permute.xlu1 %352 }
 0x6a2   :  { %v355_v51 = vmul.f32 %v353_v50, %v338_v34 }
 0x6a3   :  { %v332_v52 = vpop.permute.xlu0 %331 }
 0x6a4   :  { %v334_v53 = vmul.f32 %v332_v52, %v317_v36  ;;  %357 = vrot.lane.b32.xlu0 %v355_v51, %s1356_s8 }
 0x6a6   :  { %361 = vrot.lane.b32.xlu1 %v334_v53, %s1353_s0 }
 0x716   :  { %v358_v54 = vpop.permute.xlu0 %357 }
 0x718   :  { %v362_v55 = vpop.permute.xlu1 %361 }
 0x719   :  { %v364_v56 = vsel %vm94_vm3, %v358_v54, %v362_v55 }
 0x71a   :  { %1202 = vmatmul.mubr.msk.f32.vlgmr.msra.gmra.mxu0 %vm96_vm4, %v364_v56 }
 0x71b   :  { %643 = vmatpush1.msra.mxu0 %v1414_v14  ;;  %690 = vmatprep.mubr.f32.mxu0 %v1355_v30 }
 0x71c   :  { %644 = vmatprep.subr.mxu0 %v1416_v15 }
 0x71d   :  { %645 = vmatpush1.msra.mxu0 %v1419_v16 }
 0x71e   :  { %646 = vmatprep.subr.mxu0 %v1423_v17 }
 0x71f   :  { %647 = vmatpush1.msra.mxu0 %v1427_v18 }
 0x720   :  { %648 = vmatprep.subr.mxu0 %v1431_v19 }
 0x721   :  { %649 = vmatpush1.msra.mxu0 %v1435_v20 }
 0x722   :  { %650 = vmatprep.subr.mxu0 %v1439_v21 }
 0x723   :  { %651 = vmatpush1.msra.mxu0 %v1443_v22 }
 0x724   :  { %652 = vmatprep.subr.mxu0 %v1447_v23 }
 0x725   :  { %653 = vmatpush1.msra.mxu0 %v1451_v24 }
 0x726   :  { %654 = vmatprep.subr.mxu0 %v1455_v26 }
 0x727   :  { %655 = vmatpush1.msra.mxu0 %v1459_v27 }
 0x728   :  { %656 = vmatprep.subr.mxu0 %v1468_v28 }
 0x729   :  { %657 = vmatpush1.msra.mxu0 %v1471_v29 }
 0x72a   :  { %900 = vmatprep.subr.mxu0 %v1412_v13 }
 0x7da   :  { %v434_v58 = vpop.f32.mrf.mxu0 }
 0x7db   :  { %v441_v59 = vadd.f32 %v440_v57, %v434_v58 }
 0x7dc   :  { %v436_v60 = vpop.f32.mrf.mxu0 }
 0x7dd   :  { %v464_v61 = vmul.f32 %v441_v59, %v1397_v4  ;;  %v442_v62 = vadd.f32 %v1504_v37, %v436_v60 }
 0x7df   :  { %1258 = vtanh.f32 %v464_v61  ;;  %v443_v63 = vmul.f32 %v442_v62, %v1397_v4 }
 0x7e1   :  { %1260 = vtanh.f32 %v443_v63 }
 0x7ec   :  { %v1259_v0 = vpop.eup %1258 }
 0x7ed   :  { %v466_v1 = vmul.f32 %v1259_v0, %v1397_v4 }
 0x7ee   :  { %v1261_v2 = vpop.eup %1260 }
 0x7ef   :  { %v467_v3 = vadd.f32 %v466_v1, %v1400_v8  ;;  %v445_v5 = vmul.f32 %v1261_v2, %v1397_v4 }
 0x7f1   :  { %470 = vrot.lane.b32.xlu1 %v467_v3, %s1353_s0  ;;  %v446_v6 = vadd.f32 %v445_v5, %v1400_v8  ;;  %v468_v12 = vmul.f32 %v467_v3, %v349_v44 }
 0x7f3   :  { %449 = vrot.lane.b32.xlu0 %v446_v6, %s1353_s0  ;;  %v447_v32 = vmul.f32 %v446_v6, %v328_v47 }
 0x863   :  { %v471_v7 = vpop.permute.xlu1 %470 }
 0x864   :  { %v473_v9 = vmul.f32 %v471_v7, %v467_v3 }
 0x865   :  { %v450_v10 = vpop.permute.xlu0 %449 }
 0x866   :  { %v452_v11 = vmul.f32 %v450_v10, %v446_v6  ;;  %475 = vrot.lane.b32.xlu1 %v473_v9, %s1356_s8 }
 0x868   :  { %454 = vrot.lane.b32.xlu0 %v452_v11, %s1356_s8 }
 0x8d8   :  { %v476_v25 = vpop.permute.xlu1 %475 }
 0x8d9   :  { %v478_v31 = vadd.f32 %v476_v25, %v468_v12 }
 0x8da   :  { %v455_v33 = vpop.permute.xlu0 %454 }
 0x8db   :  { %1262 = vtanh.f32 %v478_v31  ;;  %v457_v34 = vadd.f32 %v455_v33, %v447_v32 }
 0x8dd   :  { %1264 = vtanh.f32 %v457_v34 }
 0x8e8   :  { %v1263_v35 = vpop.eup %1262 }
 0x8e9   :  { %481 = vrot.lane.b32.xlu1 %v1263_v35, %s1353_s0 }
 0x8ea   :  { %v1265_v36 = vpop.eup %1264 }
 0x8eb   :  { %460 = vrot.lane.b32.xlu0 %v1265_v36, %s1353_s0 }
 0x95b   :  { %v482_v38 = vpop.permute.xlu1 %481 }
 0x95c   :  { %v484_v39 = vmul.f32 %v482_v38, %v467_v3 }
 0x95d   :  { %v461_v40 = vpop.permute.xlu0 %460 }
 0x95e   :  { %v463_v41 = vmul.f32 %v461_v40, %v446_v6  ;;  %486 = vrot.lane.b32.xlu0 %v484_v39, %s1356_s8 }
 0x960   :  { %490 = vrot.lane.b32.xlu1 %v463_v41, %s1353_s0 }
 0x9d0   :  { %v487_v42 = vpop.permute.xlu0 %486 }
 0x9d2   :  { %v491_v43 = vpop.permute.xlu1 %490 }
 0x9d3   :  { %v493_v44 = vsel %vm94_vm3, %v487_v42, %v491_v43 }
 0x9d4   :  { %1203 = vmatmul.mubr.msk.f32.vlgmr.msra.gmra.mxu1 %vm96_vm4, %v493_v44 }
 0x9d5   :  { %772 = vmatpush1.msra.mxu1 %v1414_v14  ;;  %819 = vmatprep.mubr.f32.mxu1 %v1355_v30 }
 0x9d6   :  { %773 = vmatprep.subr.mxu1 %v1416_v15 }
 0x9d7   :  { %774 = vmatpush1.msra.mxu1 %v1419_v16 }
 0x9d8   :  { %775 = vmatprep.subr.mxu1 %v1423_v17 }
 0x9d9   :  { %776 = vmatpush1.msra.mxu1 %v1427_v18 }
 0x9da   :  { %777 = vmatprep.subr.mxu1 %v1431_v19 }
 0x9db   :  { %778 = vmatpush1.msra.mxu1 %v1435_v20 }
 0x9dc   :  { %779 = vmatprep.subr.mxu1 %v1439_v21 }
 0x9dd   :  { %780 = vmatpush1.msra.mxu1 %v1443_v22 }
 0x9de   :  { %781 = vmatprep.subr.mxu1 %v1447_v23 }
 0x9df   :  { %782 = vmatpush1.msra.mxu1 %v1451_v24 }
 0x9e0   :  { %783 = vmatprep.subr.mxu1 %v1455_v26 }
 0x9e1   :  { %784 = vmatpush1.msra.mxu1 %v1459_v27 }
 0x9e2   :  { %785 = vmatprep.subr.mxu1 %v1468_v28 }
 0x9e3   :  { %786 = vmatpush1.msra.mxu1 %v1471_v29 }
 0x9e4   :  { %1029 = vmatprep.subr.mxu1 %v1412_v13 }
 0xa94   :  { %v563_v46 = vpop.f32.mrf.mxu1 }
 0xa95   :  { %v570_v47 = vadd.f32 %v569_v45, %v563_v46 }
 0xa96   :  { %v565_v48 = vpop.f32.mrf.mxu1 }
 0xa97   :  { %v593_v49 = vmul.f32 %v570_v47, %v1397_v4  ;;  %v571_v50 = vadd.f32 %v1504_v37, %v565_v48 }
 0xa99   :  { %1266 = vtanh.f32 %v593_v49  ;;  %v572_v51 = vmul.f32 %v571_v50, %v1397_v4 }
 0xa9b   :  { %1268 = vtanh.f32 %v572_v51 }
 0xaa6   :  { %v1267_v52 = vpop.eup %1266 }
 0xaa7   :  { %v595_v53 = vmul.f32 %v1267_v52, %v1397_v4 }
 0xaa8   :  { %v1269_v54 = vpop.eup %1268 }
 0xaa9   :  { %v596_v55 = vadd.f32 %v595_v53, %v1400_v8  ;;  %v574_v13 = vmul.f32 %v1269_v54, %v1397_v4 }
 0xaab   :  { %599 = vrot.lane.b32.xlu1 %v596_v55, %s1353_s0  ;;  %v575_v56 = vadd.f32 %v574_v13, %v1400_v8  ;;  %v597_v61 = vmul.f32 %v596_v55, %v478_v31  ;;  %v698_v31 = vld [vmem:[#allocation3 + $0x28] sm:$0xff] }
 0xaad   :  { %578 = vrot.lane.b32.xlu0 %v575_v56, %s1353_s0  ;;  %v576_v0 = vmul.f32 %v575_v56, %v457_v34 }
 0xb1d   :  { %v600_v57 = vpop.permute.xlu1 %599 }
 0xb1e   :  { %v602_v58 = vmul.f32 %v600_v57, %v596_v55 }
 0xb1f   :  { %v579_v59 = vpop.permute.xlu0 %578 }
 0xb20   :  { %v581_v60 = vmul.f32 %v579_v59, %v575_v56  ;;  %604 = vrot.lane.b32.xlu1 %v602_v58, %s1356_s8 }
 0xb22   :  { %583 = vrot.lane.b32.xlu0 %v581_v60, %s1356_s8 }
 0xb92   :  { %v605_v62 = vpop.permute.xlu1 %604 }
 0xb93   :  { %v607_v63 = vadd.f32 %v605_v62, %v597_v61 }
 0xb94   :  { %v584_v1 = vpop.permute.xlu0 %583 }
 0xb95   :  { %1270 = vtanh.f32 %v607_v63  ;;  %v586_v2 = vadd.f32 %v584_v1, %v576_v0 }
 0xb97   :  { %1272 = vtanh.f32 %v586_v2 }
 0xba2   :  { %v1271_v3 = vpop.eup %1270 }
 0xba3   :  { %610 = vrot.lane.b32.xlu1 %v1271_v3, %s1353_s0 }
 0xba4   :  { %v1273_v5 = vpop.eup %1272 }
 0xba5   :  { %589 = vrot.lane.b32.xlu0 %v1273_v5, %s1353_s0 }
 0xc15   :  { %v611_v6 = vpop.permute.xlu1 %610 }
 0xc16   :  { %v613_v7 = vmul.f32 %v611_v6, %v596_v55 }
 0xc17   :  { %v590_v9 = vpop.permute.xlu0 %589 }
 0xc18   :  { %v592_v10 = vmul.f32 %v590_v9, %v575_v56  ;;  %615 = vrot.lane.b32.xlu0 %v613_v7, %s1356_s8 }
 0xc1a   :  { %619 = vrot.lane.b32.xlu1 %v592_v10, %s1353_s0 }
 0xc8a   :  { %v616_v11 = vpop.permute.xlu0 %615 }
 0xc8c   :  { %v620_v12 = vpop.permute.xlu1 %619 }
 0xc8d   :  { %v622_v25 = vsel %vm94_vm3, %v616_v11, %v620_v12 }
 0xc8e   :  { %1204 = vmatmul.mubr.msk.f32.vlgmr.msra.gmra.mxu0 %vm96_vm4, %v622_v25 }
 0xc8f   :  { %901 = vmatpush1.msra.mxu0 %v1414_v14  ;;  %948 = vmatprep.mubr.f32.mxu0 %v1355_v30 }
 0xc90   :  { %902 = vmatprep.subr.mxu0 %v1416_v15 }
 0xc91   :  { %903 = vmatpush1.msra.mxu0 %v1419_v16 }
 0xc92   :  { %904 = vmatprep.subr.mxu0 %v1423_v17 }
 0xc93   :  { %905 = vmatpush1.msra.mxu0 %v1427_v18 }
 0xc94   :  { %906 = vmatprep.subr.mxu0 %v1431_v19 }
 0xc95   :  { %907 = vmatpush1.msra.mxu0 %v1435_v20 }
 0xc96   :  { %908 = vmatprep.subr.mxu0 %v1439_v21 }
 0xc97   :  { %909 = vmatpush1.msra.mxu0 %v1443_v22 }
 0xc98   :  { %910 = vmatprep.subr.mxu0 %v1447_v23 }
 0xc99   :  { %911 = vmatpush1.msra.mxu0 %v1451_v24 }
 0xc9a   :  { %912 = vmatprep.subr.mxu0 %v1455_v26 }
 0xc9b   :  { %913 = vmatpush1.msra.mxu0 %v1459_v27 }
 0xc9c   :  { %914 = vmatprep.subr.mxu0 %v1468_v28 }
 0xc9d   :  { %915 = vmatpush1.msra.mxu0 %v1471_v29 }
 0xc9e   :  { %1215 = vmatprep.subr.mxu0 %v1355_v30 }
 0xd4e   :  { %v692_v32 = vpop.f32.mrf.mxu0 }
 0xd4f   :  { %v699_v33 = vadd.f32 %v698_v31, %v692_v32 }
 0xd50   :  { %v694_v34 = vpop.f32.mrf.mxu0 }
 0xd51   :  { %v722_v35 = vmul.f32 %v699_v33, %v1397_v4  ;;  %v700_v36 = vadd.f32 %v1504_v37, %v694_v34 }
 0xd53   :  { %1274 = vtanh.f32 %v722_v35  ;;  %v701_v38 = vmul.f32 %v700_v36, %v1397_v4  ;;  %v956_v35 = vld [vmem:[#allocation3 + $0x38] sm:$0xff] }
 0xd55   :  { %1276 = vtanh.f32 %v701_v38 }
 0xd60   :  { %v1275_v39 = vpop.eup %1274 }
 0xd61   :  { %v724_v40 = vmul.f32 %v1275_v39, %v1397_v4 }
 0xd62   :  { %v1277_v41 = vpop.eup %1276 }
 0xd63   :  { %v725_v42 = vadd.f32 %v724_v40, %v1400_v8  ;;  %v703_v43 = vmul.f32 %v1277_v41, %v1397_v4 }
 0xd65   :  { %728 = vrot.lane.b32.xlu1 %v725_v42, %s1353_s0  ;;  %v704_v44 = vadd.f32 %v703_v43, %v1400_v8  ;;  %v726_v49 = vmul.f32 %v725_v42, %v607_v63 }
 0xd67   :  { %707 = vrot.lane.b32.xlu0 %v704_v44, %s1353_s0  ;;  %v705_v52 = vmul.f32 %v704_v44, %v586_v2 }
 0xdd7   :  { %v729_v45 = vpop.permute.xlu1 %728 }
 0xdd8   :  { %v731_v46 = vmul.f32 %v729_v45, %v725_v42 }
 0xdd9   :  { %v708_v47 = vpop.permute.xlu0 %707 }
 0xdda   :  { %v710_v48 = vmul.f32 %v708_v47, %v704_v44  ;;  %733 = vrot.lane.b32.xlu1 %v731_v46, %s1356_s8 }
 0xddc   :  { %712 = vrot.lane.b32.xlu0 %v710_v48, %s1356_s8 }
 0xe4c   :  { %v734_v50 = vpop.permute.xlu1 %733 }
 0xe4d   :  { %v736_v51 = vadd.f32 %v734_v50, %v726_v49 }
 0xe4e   :  { %v713_v53 = vpop.permute.xlu0 %712 }
 0xe4f   :  { %1278 = vtanh.f32 %v736_v51  ;;  %v715_v54 = vadd.f32 %v713_v53, %v705_v52 }
 0xe51   :  { %1280 = vtanh.f32 %v715_v54 }
 0xe5c   :  { %v1279_v55 = vpop.eup %1278 }
 0xe5d   :  { %739 = vrot.lane.b32.xlu1 %v1279_v55, %s1353_s0 }
 0xe5e   :  { %v1281_v13 = vpop.eup %1280 }
 0xe5f   :  { %718 = vrot.lane.b32.xlu0 %v1281_v13, %s1353_s0 }
 0xecf   :  { %v740_v56 = vpop.permute.xlu1 %739 }
 0xed0   :  { %v742_v57 = vmul.f32 %v740_v56, %v725_v42 }
 0xed1   :  { %v719_v58 = vpop.permute.xlu0 %718 }
 0xed2   :  { %v721_v59 = vmul.f32 %v719_v58, %v704_v44  ;;  %744 = vrot.lane.b32.xlu0 %v742_v57, %s1356_s8 }
 0xed4   :  { %748 = vrot.lane.b32.xlu1 %v721_v59, %s1353_s0 }
 0xf44   :  { %v745_v60 = vpop.permute.xlu0 %744 }
 0xf46   :  { %v749_v61 = vpop.permute.xlu1 %748 }
 0xf47   :  { %v751_v62 = vsel %vm94_vm3, %v745_v60, %v749_v61 }
 0xf48   :  { %1205 = vmatmul.mubr.msk.f32.vlgmr.msra.gmra.mxu1 %vm96_vm4, %v751_v62 }
 0xf49   :  { %1030 = vmatpush1.msra.mxu1 %v1414_v14  ;;  %1077 = vmatprep.mubr.f32.mxu1 %v1355_v30  ;;  %v827_v14 = vld [vmem:[#allocation3 + $0x30] sm:$0xff] }
 0xf4a   :  { %1031 = vmatprep.subr.mxu1 %v1416_v15 }
 0xf4b   :  { %1032 = vmatpush1.msra.mxu1 %v1419_v16 }
 0xf4c   :  { %1033 = vmatprep.subr.mxu1 %v1423_v17 }
 0xf4d   :  { %1034 = vmatpush1.msra.mxu1 %v1427_v18 }
 0xf4e   :  { %1035 = vmatprep.subr.mxu1 %v1431_v19 }
 0xf4f   :  { %1036 = vmatpush1.msra.mxu1 %v1435_v20 }
 0xf50   :  { %1037 = vmatprep.subr.mxu1 %v1439_v21 }
 0xf51   :  { %1038 = vmatpush1.msra.mxu1 %v1443_v22 }
 0xf52   :  { %1039 = vmatprep.subr.mxu1 %v1447_v23 }
 0xf53   :  { %1040 = vmatpush1.msra.mxu1 %v1451_v24 }
 0xf54   :  { %1041 = vmatprep.subr.mxu1 %v1455_v26 }
 0xf55   :  { %1042 = vmatpush1.msra.mxu1 %v1459_v27 }
 0xf56   :  { %1043 = vmatprep.subr.mxu1 %v1468_v28 }
 0xf57   :  { %1044 = vmatpush1.msra.mxu1 %v1471_v29 }
0x1008   :  { %v821_v15 = vpop.f32.mrf.mxu1 }
0x1009   :  { %v828_v16 = vadd.f32 %v827_v14, %v821_v15 }
0x100a   :  { %v823_v17 = vpop.f32.mrf.mxu1 }
0x100b   :  { %v851_v18 = vmul.f32 %v828_v16, %v1397_v4  ;;  %v829_v19 = vadd.f32 %v1504_v37, %v823_v17 }
0x100d   :  { %1282 = vtanh.f32 %v851_v18  ;;  %v830_v20 = vmul.f32 %v829_v19, %v1397_v4 }
0x100f   :  { %1284 = vtanh.f32 %v830_v20 }
0x101a   :  { %v1283_v21 = vpop.eup %1282 }
0x101b   :  { %v853_v22 = vmul.f32 %v1283_v21, %v1397_v4 }
0x101c   :  { %v1285_v23 = vpop.eup %1284 }
0x101d   :  { %v854_v24 = vadd.f32 %v853_v22, %v1400_v8  ;;  %v832_v26 = vmul.f32 %v1285_v23, %v1397_v4 }
0x101f   :  { %857 = vrot.lane.b32.xlu1 %v854_v24, %s1353_s0  ;;  %v833_v27 = vadd.f32 %v832_v26, %v1400_v8  ;;  %v855_v1 = vmul.f32 %v854_v24, %v736_v51 }
0x1021   :  { %836 = vrot.lane.b32.xlu0 %v833_v27, %s1353_s0  ;;  %v834_v5 = vmul.f32 %v833_v27, %v715_v54 }
0x1091   :  { %v858_v28 = vpop.permute.xlu1 %857 }
0x1092   :  { %v860_v29 = vmul.f32 %v858_v28, %v854_v24 }
0x1093   :  { %v837_v63 = vpop.permute.xlu0 %836 }
0x1094   :  { %v839_v0 = vmul.f32 %v837_v63, %v833_v27  ;;  %862 = vrot.lane.b32.xlu1 %v860_v29, %s1356_s8 }
0x1096   :  { %841 = vrot.lane.b32.xlu0 %v839_v0, %s1356_s8  ;;  %v1105_v0 = vld [vmem:[%s1742_s3] sm:$0xff] }
0x1106   :  { %v863_v2 = vpop.permute.xlu1 %862 }
0x1107   :  { %v865_v3 = vadd.f32 %v863_v2, %v855_v1 }
0x1108   :  { %v842_v6 = vpop.permute.xlu0 %841 }
0x1109   :  { %1286 = vtanh.f32 %v865_v3  ;;  %v844_v7 = vadd.f32 %v842_v6, %v834_v5  ;;  %v1208_v6 = vld [vmem:[#allocation2] ss:$0 sm:$0xff] }
0x110b   :  { %1288 = vtanh.f32 %v844_v7 }
0x1116   :  { %v1287_v9 = vpop.eup %1286 }
0x1117   :  { %868 = vrot.lane.b32.xlu1 %v1287_v9, %s1353_s0 }
0x1118   :  { %v1289_v10 = vpop.eup %1288 }
0x1119   :  { %847 = vrot.lane.b32.xlu0 %v1289_v10, %s1353_s0 }
0x1189   :  { %v869_v11 = vpop.permute.xlu1 %868 }
0x118a   :  { %v871_v12 = vmul.f32 %v869_v11, %v854_v24 }
0x118b   :  { %v848_v25 = vpop.permute.xlu0 %847 }
0x118c   :  { %v850_v31 = vmul.f32 %v848_v25, %v833_v27  ;;  %873 = vrot.lane.b32.xlu0 %v871_v12, %s1356_s8 }
0x118e   :  { %877 = vrot.lane.b32.xlu1 %v850_v31, %s1353_s0 }
0x11fe   :  { %v874_v32 = vpop.permute.xlu0 %873 }
0x1200   :  { %v878_v33 = vpop.permute.xlu1 %877 }
0x1201   :  { %v880_v34 = vsel %vm94_vm3, %v874_v32, %v878_v33 }
0x1202   :  { %1206 = vmatmul.mubr.msk.f32.vlgmr.msra.gmra.mxu0 %vm96_vm4, %v880_v34 }
0x1203   :  { %1223 = vmatprep.mubr.msk.f32.mxu0 %vm1357_vm5, %v1355_v30 }
0x12c2   :  { %v950_v36 = vpop.f32.mrf.mxu0 }
0x12c3   :  { %v957_v38 = vadd.f32 %v956_v35, %v950_v36 }
0x12c4   :  { %v952_v39 = vpop.f32.mrf.mxu0 }
0x12c5   :  { %v980_v40 = vmul.f32 %v957_v38, %v1397_v4  ;;  %v958_v41 = vadd.f32 %v1504_v37, %v952_v39 }
0x12c7   :  { %1290 = vtanh.f32 %v980_v40  ;;  %v959_v42 = vmul.f32 %v958_v41, %v1397_v4 }
0x12c9   :  { %1292 = vtanh.f32 %v959_v42 }
0x12d4   :  { %v1291_v43 = vpop.eup %1290 }
0x12d5   :  { %v982_v44 = vmul.f32 %v1291_v43, %v1397_v4 }
0x12d6   :  { %v1293_v45 = vpop.eup %1292 }
0x12d7   :  { %v983_v46 = vadd.f32 %v982_v44, %v1400_v8  ;;  %v961_v47 = vmul.f32 %v1293_v45, %v1397_v4 }
0x12d9   :  { %986 = vrot.lane.b32.xlu1 %v983_v46, %s1353_s0  ;;  %v962_v48 = vadd.f32 %v961_v47, %v1400_v8  ;;  %v984_v53 = vmul.f32 %v983_v46, %v865_v3 }
0x12db   :  { %965 = vrot.lane.b32.xlu0 %v962_v48, %s1353_s0  ;;  %v963_v13 = vmul.f32 %v962_v48, %v844_v7 }
0x134b   :  { %v987_v49 = vpop.permute.xlu1 %986 }
0x134c   :  { %v989_v50 = vmul.f32 %v987_v49, %v983_v46 }
0x134d   :  { %v966_v51 = vpop.permute.xlu0 %965 }
0x134e   :  { %v968_v52 = vmul.f32 %v966_v51, %v962_v48  ;;  %991 = vrot.lane.b32.xlu1 %v989_v50, %s1356_s8 }
0x1350   :  { %970 = vrot.lane.b32.xlu0 %v968_v52, %s1356_s8 }
0x13c0   :  { %v992_v54 = vpop.permute.xlu1 %991 }
0x13c1   :  { %v994_v55 = vadd.f32 %v992_v54, %v984_v53 }
0x13c2   :  { %v971_v56 = vpop.permute.xlu0 %970 }
0x13c3   :  { %1294 = vtanh.f32 %v994_v55  ;;  %v973_v57 = vadd.f32 %v971_v56, %v963_v13 }
0x13c5   :  { %1296 = vtanh.f32 %v973_v57 }
0x13d0   :  { %v1295_v58 = vpop.eup %1294 }
0x13d1   :  { %997 = vrot.lane.b32.xlu1 %v1295_v58, %s1353_s0 }
0x13d2   :  { %v1297_v59 = vpop.eup %1296 }
0x13d3   :  { %976 = vrot.lane.b32.xlu0 %v1297_v59, %s1353_s0 }
0x1443   :  { %v998_v60 = vpop.permute.xlu1 %997 }
0x1444   :  { %v1000_v61 = vmul.f32 %v998_v60, %v983_v46 }
0x1445   :  { %v977_v62 = vpop.permute.xlu0 %976 }
0x1446   :  { %v979_v14 = vmul.f32 %v977_v62, %v962_v48  ;;  %1002 = vrot.lane.b32.xlu0 %v1000_v61, %s1356_s8 }
0x1448   :  { %1006 = vrot.lane.b32.xlu1 %v979_v14, %s1353_s0 }
0x14b8   :  { %v1003_v15 = vpop.permute.xlu0 %1002 }
0x14ba   :  { %v1007_v16 = vpop.permute.xlu1 %1006 }
0x14bb   :  { %v1009_v17 = vsel %vm94_vm3, %v1003_v15, %v1007_v16 }
0x14bc   :  { %1207 = vmatmul.mubr.msk.f32.vlgmr.msra.gmra.mxu1 %vm96_vm4, %v1009_v17 }
0x157c   :  { %v1079_v18 = vpop.f32.mrf.mxu1 }
0x157e   :  { %v1080_v19 = vpop.f32.mrf.mxu1 }
0x157f   :  { %v1083_v20 = vadd.f32 %v1504_v37, %v1080_v19  ;;  %v1108_v37 = vld [vmem:[%s1742_s3 + $0x18] sm:$0xff] }
0x1580   :  { %1216 = vmatpush3.msra.mxu0 %v1108_v37 }
0x1581   :  { %v1084_v21 = vmul.f32 %v1083_v20, %v1397_v4  ;;  %1217 = vmatprep.subr.mxu0 %v1355_v30 }
0x1583   :  { %1298 = vtanh.f32 %v1084_v21 }
0x1590   :  { %v1299_v22 = vpop.eup %1298 }
0x1591   :  { %v1086_v23 = vmul.f32 %v1299_v22, %v1397_v4  ;;  %v1107_v4 = vld [vmem:[%s1742_s3 + $0x10] sm:$0xff] }
0x1592   :  { %1218 = vmatpush3.msra.mxu0 %v1107_v4 }
0x1593   :  { %v1087_v24 = vadd.f32 %v1086_v23, %v1400_v8  ;;  %v1106_v8 = vld [vmem:[%s1742_s3 + $0x8] sm:$0xff]  ;;  %1219 = vmatprep.subr.mxu0 %v1355_v30 }
0x1594   :  { %1220 = vmatpush3.msra.mxu0 %v1106_v8 }
0x1595   :  { %1090 = vrot.lane.b32.xlu0 %v1087_v24, %s1353_s0  ;;  %v1088_v28 = vmul.f32 %v1087_v24, %v973_v57  ;;  %1221 = vmatprep.subr.mxu0 %v1355_v30 }
0x1596   :  { %1222 = vmatpush3.msra.mxu0 %v1105_v0 }
0x1607   :  { %v1091_v26 = vpop.permute.xlu0 %1090 }
0x1608   :  { %v1093_v27 = vmul.f32 %v1091_v26, %v1087_v24 }
0x160a   :  { %1095 = vrot.lane.b32.xlu1 %v1093_v27, %s1356_s8 }
0x167c   :  { %v1096_v29 = vpop.permute.xlu1 %1095 }
0x167d   :  { %v1098_v63 = vadd.f32 %v1096_v29, %v1088_v28 }
0x167f   :  { %1300 = vtanh.f32 %v1098_v63 }
0x168c   :  { %v1301_v1 = vpop.eup %1300 }
0x168d   :  { %1101 = vrot.lane.b32.xlu0 %v1301_v1, %s1353_s0 }
0x16ff   :  { %v1102_v2 = vpop.permute.xlu0 %1101 }
0x1700   :  { %v1104_v3 = vmul.f32 %v1102_v2, %v1087_v24 }
0x1702   :  { %1117 = vrot.lane.b32.xlu1 %v1104_v3, %s1356_s8 }
0x1774   :  { %v1118_v5 = vpop.permute.xlu1 %1117 }
0x1775   :  { %1224 = vmatmul.mubr.msk.f32.vlgmr.msra.gmra.mxu0 %vm94_vm3, %v1118_v5 }
0x1835   :  { %v1187_v7 = vpop.f32.mrf.mxu0 }
0x1836   :  { %v1188_v9 = vadd.f32 %v1208_v6, %v1187_v7 }
0x1837   :  { %v1225_v10 = vpop.f32.mrf.mxu0 }
0x1838   :  { %1192 = vst.msk [vmem:[%s1744_s5] sm:$0xff] %vm1191_vm6, %v1188_v9 }
0x1839   :  { %1197 = vsyncpa [#allocation4], 1 }
0x183a   :  { %1198 = vsyncpa [#allocation6], 1 }

</bundles_post_ra>
